<compile_context>
chip_gen: v6e
topology: v6e:2x2x1
jax: 0.10.0
libtpu: 0.0.40
codegen_flags: <defaults>
</compile_context>

<pallas_src>
import functools

import jax
import jax.numpy as jnp
from jax.experimental import pallas as pl
from jax.experimental.pallas import tpu as pltpu

_MIB = 1024 * 1024


def _round_up(v, m):
    return (v + m - 1) // m * m


def _tpu_defaults():
    """Best-effort query of per-TensorCore VMEM capacity and TensorCore count."""
    vmem_cap = 64 * _MIB          # conservative fallback (v7x per-TC figure)
    num_cores = 1                 # conservative fallback (v5e / v6e)
    try:
        info = pltpu.get_tpu_info()
        cap = getattr(info, "vmem_capacity_bytes", None)
        if cap:
            vmem_cap = int(cap)
        for name in ("num_tensorcores", "tensorcores_per_chip", "num_cores", "core_count"):
            c = getattr(info, name, None)
            if c:
                num_cores = int(c)
                break
    except Exception:
        pass
    return vmem_cap, num_cores


@functools.lru_cache(maxsize=None)
def _lane_dense_supported():
    """Probe whether Mosaic supports the (tile_n, 1) -> (tile_n//128, 128) relayout
    reshape on a matmul result.  Falls back to the lane-sparse path if not."""
    def _probe(x_ref, w_ref, o_ref):
        z = jnp.dot(x_ref[...], w_ref[...], preferred_element_type=jnp.float32)  # [256, 1]
        o_ref[...] = z.reshape(2, 128)

    try:
        f = pl.pallas_call(_probe, out_shape=jax.ShapeDtypeStruct((2, 128), jnp.float32))
        x = (jnp.arange(256 * 128, dtype=jnp.float32) / (256.0 * 128.0)).reshape(256, 128)
        w = jnp.ones((128, 1), jnp.float32)
        out = jax.block_until_ready(f(x, w))
        ref = (x @ w).reshape(2, 128)
        return bool(jnp.allclose(out, ref, rtol=1e-5, atol=1e-5))
    except Exception:
        return False


def _choose_tile_n(n, d, x_itemsize, lane_dense, block_budget_bytes):
    """Largest batch tile whose *physical* (lane-padded) VMEM footprint fits.

    Per grid step (all block inputs are double-buffered by BlockSpec):
      x tile : tile_n * round_up(D,128) * itemsize        (x2 buffers)
      t tile : lane-dense  -> tile_n * 4 B                (x2 buffers)
               lane-sparse -> tile_n * 128 * 4 B (padded) (x2 buffers)
      w block: round_up(D,8) * 128 * 4 B                  (x2 buffers, resident)
    """
    d_pad = _round_up(d, 128)
    t_row = 4 if lane_dense else 128 * 4
    per_row = 2 * d_pad * x_itemsize + 2 * t_row
    fixed = 2 * _round_up(d, 8) * 128 * 4 + 256 * 1024    # weights + accum/misc slack
    avail = max(block_budget_bytes - fixed, 8 * per_row)
    tile_n = avail // per_row
    # Cap the per-buffer x stream at ~16 MiB physical to keep grid steps reasonable.
    tile_n = min(tile_n, (16 * _MIB) // (d_pad * x_itemsize))
    tile_n = min(tile_n, 65536)
    return max(8, int(tile_n))


def _normalize_tile_n(tile_n, n, lane_dense):
    if lane_dense:
        full = _round_up(n, 128)
        if tile_n >= full:
            return full                      # single tile covers the whole batch
        # Multi-tile: tile_n must be a multiple of 1024 so the [tile_n//128, 128]
        # label block keeps its second-minor dim a multiple of 8.
        t = max(1024, (tile_n // 1024) * 1024)
        return full if t >= full else t
    full = _round_up(n, 8)
    t = max(8, (tile_n // 8) * 8)
    return min(t, full)


def _logreg_kernel(x_ref, w_ref, t_ref, o_ref, *,
                   tile_n, tiles_per_core, n_rows, lane_dense, may_need_mask):
    # x_ref: [tile_n, D] (native dtype)   w_ref: [D, 1] (resident)
    # t_ref: [tile_n//128, 128] (dense) or [tile_n, 1] (sparse fallback)
    # o_ref: [1, 1, 1] per-core partial-sum accumulator (resident across axis 1)
    p = pl.program_id(0)          # core / batch-shard index ("parallel")
    i = pl.program_id(1)          # tile index within the shard ("arbitrary" reduction)

    @pl.when(i == 0)
    def _init():
        o_ref[...] = jnp.zeros_like(o_ref)

    # Matvec on the MXU; x stays in its streamed dtype, accumulation in f32.
    z = jnp.dot(x_ref[...], w_ref[...], preferred_element_type=jnp.float32)   # [tile_n, 1]
    if lane_dense:
        # Lane-sparse column -> full vregs so the softplus uses all 128 lanes.
        z = z.reshape(tile_n // 128, 128)

    u = -t_ref[...] * z

    # Numerically stable softplus: log(1 + exp(u)) = max(u, 0) + log(1 + exp(-|u|)).
    loss = jnp.maximum(u, 0.0) + jnp.log(1.0 + jnp.exp(-jnp.abs(u)))

    row0 = (p * tiles_per_core + i) * tile_n   # un-clamped logical first row of this tile

    if may_need_mask:
        needs_mask = row0 + tile_n > n_rows

        @pl.when(needs_mask)
        def _masked_accum():
            # Only the ragged last tile (and clamped duplicate tail tiles) pay for this.
            if lane_dense:
                r = jax.lax.broadcasted_iota(jnp.int32, loss.shape, 0)
                c = jax.lax.broadcasted_iota(jnp.int32, loss.shape, 1)
                rows = row0 + r * 128 + c
            else:
                rows = row0 + jax.lax.broadcasted_iota(jnp.int32, loss.shape, 0)
            o_ref[...] += jnp.sum(jnp.where(rows < n_rows, loss, 0.0))

        @pl.when(jnp.logical_not(needs_mask))
        def _full_accum():
            o_ref[...] += jnp.sum(loss)
    else:
        o_ref[...] += jnp.sum(loss)


def logistic_regression_loss(x, params, target, *, tile_n=None, lane_dense=None,
                             num_cores=None):
    """x: [N, D] (f32 or bf16), params: [D], target: [N] in {-1,+1} -> scalar f32."""
    n, d = x.shape

    # Stream x in its native dtype (bf16 halves the dominant HBM stream).
    if x.dtype not in (jnp.float32, jnp.bfloat16):
        x = x.astype(jnp.float32)
    w_dtype = jnp.bfloat16 if x.dtype == jnp.bfloat16 else jnp.float32
    w = params.reshape(d, 1).astype(w_dtype)
    t_flat = target.reshape(n).astype(jnp.float32)

    vmem_cap, hw_cores = _tpu_defaults()
    vmem_limit = int(min(96 * _MIB, max(32 * _MIB, (vmem_cap * 3) // 4)))
    block_budget = vmem_limit - 8 * _MIB

    if lane_dense is None:
        lane_dense = _lane_dense_supported()

    x_itemsize = jnp.dtype(x.dtype).itemsize
    if tile_n is None:
        tile_n = _choose_tile_n(n, d, x_itemsize, lane_dense, block_budget)
    tile_n = _normalize_tile_n(int(tile_n), n, lane_dense)

    n_tiles = pl.cdiv(n, tile_n)
    if num_cores is None:
        num_cores = hw_cores
    num_cores = max(1, min(int(num_cores), 2, n_tiles))   # <=2 TensorCores per chip today
    tiles_per_core = pl.cdiv(n_tiles, num_cores)

    may_need_mask = (n % tile_n != 0) or (num_cores * tiles_per_core != n_tiles)

    def batch_map(p, i):
        # Clamp so duplicated tail tiles (odd split) re-read the last real block
        # instead of issuing an out-of-bounds DMA; the kernel masks them to zero.
        return (jnp.minimum(p * tiles_per_core + i, n_tiles - 1), 0)

    if lane_dense:
        # Lane-dense labels: pad to the tiled extent (free-ish, N*4 bytes) and view
        # row-major as [*, 128] so the label block wastes no lanes in VMEM.
        n_pad = n_tiles * tile_n
        t_in = jnp.pad(t_flat, (0, n_pad - n)).reshape(n_pad // 128, 128)
        t_spec = pl.BlockSpec((tile_n // 128, 128), batch_map)
    else:
        t_in = t_flat.reshape(n, 1)
        t_spec = pl.BlockSpec((tile_n, 1), batch_map)

    kernel = functools.partial(
        _logreg_kernel, tile_n=tile_n, tiles_per_core=tiles_per_core,
        n_rows=n, lane_dense=lane_dense, may_need_mask=may_need_mask)

    cost = pl.CostEstimate(
        flops=2 * n * d,
        transcendentals=2 * n,
        bytes_accessed=n * d * x_itemsize + n * 4 + d * 4 + num_cores * 4)

    partial_sums = pl.pallas_call(
        kernel,
        out_shape=jax.ShapeDtypeStruct((num_cores, 1, 1), jnp.float32),
        grid=(num_cores, tiles_per_core),
        in_specs=[
            pl.BlockSpec((tile_n, d), batch_map),        # x: streamed, double-buffered
            pl.BlockSpec((d, 1), lambda p, i: (0, 0)),   # weights resident in VMEM
            t_spec,                                      # labels streamed with x
        ],
        out_specs=pl.BlockSpec((1, 1, 1), lambda p, i: (p, 0, 0)),  # per-core accumulator
        compiler_params=pltpu.CompilerParams(
            dimension_semantics=("parallel", "arbitrary"),
            vmem_limit_bytes=vmem_limit),
        cost_estimate=cost,
    )(x, w, t_in)

    # Combine per-core partial sums and take the mean exactly once.
    return jnp.sum(partial_sums) / n


if __name__ == "__main__":
    key = jax.random.PRNGKey(0)
    k_x, k_t, k_p, k_x2, k_t2 = jax.random.split(key, 5)

    # --- Test 1: small shape, fully automatic configuration (single tile). ---
    N, D = 300, 32
    x = jax.random.normal(k_x, (N, D), dtype=jnp.float32)
    target = jnp.sign(jax.random.normal(k_t, (N,), dtype=jnp.float32))
    target = jnp.where(target == 0, 1.0, target)            # labels in {-1, +1}
    params = 0.1 * jax.random.normal(k_p, (D,), dtype=jnp.float32)

    ref = jnp.mean(jax.nn.softplus(-target * (x @ params)))
    loss = jax.block_until_ready(logistic_regression_loss(x, params, target))
    assert jnp.allclose(loss, ref, rtol=1e-5, atol=1e-5), (loss, ref)

    # --- Test 2: forced lane-sparse fallback, small tiles, 2-way core split:
    #     exercises pipelining, ragged masking and the clamped duplicate tail tile. ---
    loss_sparse = jax.block_until_ready(
        logistic_regression_loss(x, params, target, tile_n=64,
                                 lane_dense=False, num_cores=2))
    assert jnp.allclose(loss_sparse, ref, rtol=1e-5, atol=1e-5), (loss_sparse, ref)

    # --- Test 3: multi-tile run with a ragged last tile on the default path. ---
    N2 = 2600
    x2 = jax.random.normal(k_x2, (N2, D), dtype=jnp.float32)
    t2 = jnp.sign(jax.random.normal(k_t2, (N2,), dtype=jnp.float32))
    t2 = jnp.where(t2 == 0, 1.0, t2)
    ref2 = jnp.mean(jax.nn.softplus(-t2 * (x2 @ params)))
    loss2 = jax.block_until_ready(
        logistic_regression_loss(x2, params, t2, tile_n=1024))
    assert jnp.allclose(loss2, ref2, rtol=1e-5, atol=1e-5), (loss2, ref2)

    # --- Test 4: bf16 input streamed without upcast (bf16 MXU, f32 accumulate). ---
    x_bf16 = x.astype(jnp.bfloat16)
    w_bf16 = params.astype(jnp.bfloat16).astype(jnp.float32)
    ref_bf16 = jnp.mean(jax.nn.softplus(
        -target * (x_bf16.astype(jnp.float32) @ w_bf16)))
    loss_bf16 = jax.block_until_ready(
        logistic_regression_loss(x_bf16, params, target))
    assert jnp.allclose(loss_bf16, ref_bf16, rtol=2e-2, atol=2e-2), (loss_bf16, ref_bf16)

    print("KERNEL_OK")
</pallas_src>

<mosaic_0001>
module attributes {stable_mosaic.version = 11 : i64} {
  func.func @_probe(%arg0: memref<256x128xf32, #tpu.memory_space<vmem>>, %arg1: memref<128x1xf32, #tpu.memory_space<vmem>>, %arg2: memref<2x128xf32, #tpu.memory_space<vmem>>) attributes {dimension_semantics = [], scalar_prefetch = 0 : i64, scratch_operands = 0 : i64, tpu.core_type = #tpu.core_type<tc>} {
    %c0 = arith.constant 0 : index
    %c0_0 = arith.constant 0 : index
    %0 = vector.load %arg0[%c0, %c0_0] : memref<256x128xf32, #tpu.memory_space<vmem>>, vector<256x128xf32>
    %c0_1 = arith.constant 0 : index
    %c0_2 = arith.constant 0 : index
    %1 = vector.load %arg1[%c0_1, %c0_2] : memref<128x1xf32, #tpu.memory_space<vmem>>, vector<128x1xf32>
    %cst = arith.constant dense<0.000000e+00> : vector<256x1xf32>
    %2 = tpu.matmul %0, %1, %cst {dimension_numbers = #tpu.dot_dimension_numbers<[1], [0], [0], [1], [0, 0, 1, 1], [], []>} : vector<256x128xf32>, vector<128x1xf32>, vector<256x1xf32> -> vector<256x1xf32>
    %3 = vector.shape_cast %2 : vector<256x1xf32> to vector<2x128xf32>
    %c0_3 = arith.constant 0 : index
    %c0_4 = arith.constant 0 : index
    %4 = vector.load %arg2[%c0_3, %c0_4] : memref<2x128xf32, #tpu.memory_space<vmem>>, vector<2x128xf32>
    tpu.vector_store %arg2[%c0_3, %c0_4], %3 {strides = array<i32>} : memref<2x128xf32, #tpu.memory_space<vmem>>, vector<2x128xf32>,
    return
  }
}

module attributes {stable_mosaic.version = 11 : i64} {
  func.func @_logreg_kernel(%arg0: i32, %arg1: i32, %arg2: memref<304x32xf32, #tpu.memory_space<vmem>>, %arg3: memref<32x1xf32, #tpu.memory_space<vmem>>, %arg4: memref<304x1xf32, #tpu.memory_space<vmem>>, %arg5: memref<1x1x1xf32, #tpu.memory_space<vmem>>) attributes {dimension_semantics = [#tpu.dimension_semantics<parallel>, #tpu.dimension_semantics<arbitrary>], iteration_bounds = array<i64: 1, 1>, scalar_prefetch = 0 : i64, scratch_operands = 0 : i64, tpu.core_type = #tpu.core_type<tc>, window_params = [{transform_indices = @transform_0, window_bounds = array<i64: 304, 32>}, {pipeline_mode = #tpu.pipeline_mode<synchronous>, transform_indices = @transform_1, window_bounds = array<i64: 32, 1>}, {transform_indices = @transform_2, window_bounds = array<i64: 304, 1>}, {transform_indices = @transform_3, window_bounds = array<i64: 1, 1, 1>}]} {
    %c0_i32 = arith.constant 0 : i32
    %0 = arith.cmpi eq, %arg1, %c0_i32 : i32
    %1 = arith.extui %0 : i1 to i32
    %c0_i32_0 = arith.constant 0 : i32
    %2 = arith.cmpi ne, %1, %c0_i32_0 : i32
    scf.if %2 {
      %cst_13 = arith.constant 0.000000e+00 : f32
      %30 = vector.broadcast %cst_13 : f32 to vector<1x1x1xf32>
      %c0_14 = arith.constant 0 : index
      %c0_15 = arith.constant 0 : index
      %c0_16 = arith.constant 0 : index
      %31 = vector.load %arg5[%c0_14, %c0_15, %c0_16] : memref<1x1x1xf32, #tpu.memory_space<vmem>>, vector<1x1x1xf32>
      tpu.vector_store %arg5[%c0_14, %c0_15, %c0_16], %30 {strides = array<i32>} : memref<1x1x1xf32, #tpu.memory_space<vmem>>, vector<1x1x1xf32>,
    } else {
    }
    %c0 = arith.constant 0 : index
    %c0_1 = arith.constant 0 : index
    %3 = vector.load %arg2[%c0, %c0_1] : memref<304x32xf32, #tpu.memory_space<vmem>>, vector<304x32xf32>
    %c0_2 = arith.constant 0 : index
    %c0_3 = arith.constant 0 : index
    %4 = vector.load %arg3[%c0_2, %c0_3] : memref<32x1xf32, #tpu.memory_space<vmem>>, vector<32x1xf32>
    %cst = arith.constant dense<0.000000e+00> : vector<304x1xf32>
    %5 = tpu.matmul %3, %4, %cst {dimension_numbers = #tpu.dot_dimension_numbers<[1], [0], [0], [1], [0, 0, 1, 1], [], []>} : vector<304x32xf32>, vector<32x1xf32>, vector<304x1xf32> -> vector<304x1xf32>
    %c0_4 = arith.constant 0 : index
    %c0_5 = arith.constant 0 : index
    %6 = vector.load %arg4[%c0_4, %c0_5] : memref<304x1xf32, #tpu.memory_space<vmem>>, vector<304x1xf32>
    %cst_6 = arith.constant 0.000000e+00 : f32
    %7 = vector.broadcast %cst_6 : f32 to vector<304x1xf32>
    %8 = arith.subf %7, %6 : vector<304x1xf32>
    %9 = arith.mulf %8, %5 : vector<304x1xf32>
    %cst_7 = arith.constant 0.000000e+00 : f32
    %10 = vector.broadcast %cst_7 : f32 to vector<304x1xf32>
    %11 = arith.maximumf %9, %10 : vector<304x1xf32>
    %12 = math.absf %9 : vector<304x1xf32>
    %cst_8 = arith.constant 0.000000e+00 : f32
    %13 = vector.broadcast %cst_8 : f32 to vector<304x1xf32>
    %14 = arith.subf %13, %12 : vector<304x1xf32>
    %15 = math.exp %14 : vector<304x1xf32>
    %cst_9 = arith.constant 1.000000e+00 : f32
    %16 = vector.broadcast %cst_9 : f32 to vector<304x1xf32>
    %17 = arith.addf %16, %15 : vector<304x1xf32>
    %18 = math.log %17 : vector<304x1xf32>
    %19 = arith.addf %11, %18 : vector<304x1xf32>
    %c1_i32 = arith.constant 1 : i32
    %20 = arith.muli %arg0, %c1_i32 : i32
    %21 = arith.addi %20, %arg1 : i32
    %c304_i32 = arith.constant 304 : i32
    %22 = arith.muli %21, %c304_i32 : i32
    %c304_i32_10 = arith.constant 304 : i32
    %23 = arith.addi %22, %c304_i32_10 : i32
    %c300_i32 = arith.constant 300 : i32
    %24 = arith.cmpi sgt, %23, %c300_i32 : i32
    %25 = arith.extui %24 : i1 to i32
    %c0_i32_11 = arith.constant 0 : i32
    %26 = arith.cmpi ne, %25, %c0_i32_11 : i32
    scf.if %26 {
      %30 = tpu.iota {dimensions = array<i32: 0>} : vector<304x1xi32>
      %31 = vector.broadcast %22 : i32 to vector<304x1xi32>
      %32 = arith.addi %31, %30 : vector<304x1xi32>
      %c0_13 = arith.constant 0 : index
      %c0_14 = arith.constant 0 : index
      %c0_15 = arith.constant 0 : index
      %33 = vector.load %arg5[%c0_13, %c0_14, %c0_15] : memref<1x1x1xf32, #tpu.memory_space<vmem>>, vector<1x1x1xf32>
      %c300_i32_16 = arith.constant 300 : i32
      %34 = vector.broadcast %c300_i32_16 : i32 to vector<304x1xi32>
      %35 = arith.cmpi slt, %32, %34 : vector<304x1xi32>
      %cst_17 = arith.constant 0.000000e+00 : f32
      %36 = vector.broadcast %cst_17 : f32 to vector<304x1xf32>
      %37 = arith.select %35, %19, %36 : vector<304x1xi1>, vector<304x1xf32>
      %38 = vector.shape_cast %37 : vector<304x1xf32> to vector<1x304x1xf32>
      %cst_18 = arith.constant dense<0.000000e+00> : vector<1xf32>
      %39 = vector.multi_reduction <add>, %38, %cst_18 [1, 2] : vector<1x304x1xf32> to vector<1xf32>
      %40 = vector.shape_cast %39 : vector<1xf32> to vector<1x1x1xf32>
      %41 = vector.extract %40[0, 0, 0] : f32 from vector<1x1x1xf32>
      %42 = vector.broadcast %41 : f32 to vector<1x1x1xf32>
      %43 = arith.addf %33, %42 : vector<1x1x1xf32>
      %c0_19 = arith.constant 0 : index
      %c0_20 = arith.constant 0 : index
      %c0_21 = arith.constant 0 : index
      %44 = vector.load %arg5[%c0_19, %c0_20, %c0_21] : memref<1x1x1xf32, #tpu.memory_space<vmem>>, vector<1x1x1xf32>
      tpu.vector_store %arg5[%c0_19, %c0_20, %c0_21], %43 {strides = array<i32>} : memref<1x1x1xf32, #tpu.memory_space<vmem>>, vector<1x1x1xf32>,
    } else {
    }
    %true = arith.constant true
    %27 = arith.xori %24, %true : i1
    %28 = arith.extui %27 : i1 to i32
    %c0_i32_12 = arith.constant 0 : i32
    %29 = arith.cmpi ne, %28, %c0_i32_12 : i32
    scf.if %29 {
      %c0_13 = arith.constant 0 : index
      %c0_14 = arith.constant 0 : index
      %c0_15 = arith.constant 0 : index
      %30 = vector.load %arg5[%c0_13, %c0_14, %c0_15] : memref<1x1x1xf32, #tpu.memory_space<vmem>>, vector<1x1x1xf32>
      %31 = vector.shape_cast %19 : vector<304x1xf32> to vector<1x304x1xf32>
      %cst_16 = arith.constant dense<0.000000e+00> : vector<1xf32>
      %32 = vector.multi_reduction <add>, %31, %cst_16 [1, 2] : vector<1x304x1xf32> to vector<1xf32>
      %33 = vector.shape_cast %32 : vector<1xf32> to vector<1x1x1xf32>
      %34 = vector.extract %33[0, 0, 0] : f32 from vector<1x1x1xf32>
      %35 = vector.broadcast %34 : f32 to vector<1x1x1xf32>
      %36 = arith.addf %30, %35 : vector<1x1x1xf32>
      %c0_17 = arith.constant 0 : index
      %c0_18 = arith.constant 0 : index
      %c0_19 = arith.constant 0 : index
      %37 = vector.load %arg5[%c0_17, %c0_18, %c0_19] : memref<1x1x1xf32, #tpu.memory_space<vmem>>, vector<1x1x1xf32>
      tpu.vector_store %arg5[%c0_17, %c0_18, %c0_19], %36 {strides = array<i32>} : memref<1x1x1xf32, #tpu.memory_space<vmem>>, vector<1x1x1xf32>,
    } else {
    }
    return
  }
  func.func @transform_0(%arg0: i32, %arg1: i32) -> (i32, i32) {
    %c1_i32 = arith.constant 1 : i32
    %0 = arith.muli %arg0, %c1_i32 : i32
    %1 = arith.addi %0, %arg1 : i32
    %c0_i32 = arith.constant 0 : i32
    %2 = arith.minsi %1, %c0_i32 : i32
    %c0_i32_0 = arith.constant 0 : i32
    %c0_i32_1 = arith.constant 0 : i32
    return %2, %c0_i32_0 : i32, i32
  }
  func.func @transform_1(%arg0: i32, %arg1: i32) -> (i32, i32) {
    %c0_i32 = arith.constant 0 : i32
    %c0_i32_0 = arith.constant 0 : i32
    %c0_i32_1 = arith.constant 0 : i32
    return %c0_i32, %c0_i32_0 : i32, i32
  }
  func.func @transform_2(%arg0: i32, %arg1: i32) -> (i32, i32) {
    %c1_i32 = arith.constant 1 : i32
    %0 = arith.muli %arg0, %c1_i32 : i32
    %1 = arith.addi %0, %arg1 : i32
    %c0_i32 = arith.constant 0 : i32
    %2 = arith.minsi %1, %c0_i32 : i32
    %c0_i32_0 = arith.constant 0 : i32
    %c0_i32_1 = arith.constant 0 : i32
    return %2, %c0_i32_0 : i32, i32
  }
  func.func @transform_3(%arg0: i32, %arg1: i32) -> (i32, i32, i32) {
    %c0_i32 = arith.constant 0 : i32
    %c0_i32_0 = arith.constant 0 : i32
    %c0_i32_1 = arith.constant 0 : i32
    return %arg0, %c0_i32, %c0_i32_0 : i32, i32, i32
  }
}

</mosaic_0001>

<bundles_post_ra>
// kernel: tpu_custom_call.1
= control target key start
LH: loop header
LB: loop body
LE: loop exit
PB: predicated region body
PF: predicated region fallthrough
CT: control target
= control target key end

     0   :  { %7 = vsyncpa [#allocation3], 0  ;;  %s1005_s0 = inlined_call_operand.hbm [shape: f32[256,128], index: 0, kind: input, shape index: {}]   ;;  %s1006_s1 = inlined_call_operand.vmem [shape: f32[128,1], index: 1, kind: input, shape index: {}]   ;;  %s1007_s2 = inlined_call_operand.hbm [shape: f32[2,128], index: 2, kind: output, shape index: {}]  }
   0x1   :  { %8 = vsyncpa [#allocation4], 0  ;;  %s847_s9 = smov [#allocation2]  }
   0x2   :  { %s14_s10 = sshll.u32 %s847_s9, 4  ;;  %s15_s10 = int_to_ptr.vmem [resolvable:$true] %s14_s10 }
   0x3   :  { %s811_s11 = scalar_lea.vmem %s15_s10, 4096  ;;  %p816_p1 = scmp.lt.s32.totalorder %s15_s10, %s15_s10 }
   0x4   :  { %p812_p0 = scmp.ne.s32.totalorder %s15_s10, %s811_s11  ;;  %p817_p2 = scmp.lt.s32.totalorder %s811_s11, %s811_s11 }
   0x6   :  { %p818_p3 = por %p817_p2, %p816_p1 }
   0x8   :  { %p819_p4 = pnand %p818_p3, %p812_p0 }
   0xa   :  { %822 = shalt.err (!%p819_p4)
}
   0xb   :  { %s848_s12 = smov 128   ;;  %s849_s13 = smov 8  }
   0xc   :  { %20 = dma.hbm_to_vmem [thread:$0]  %s1005_s0, 4096, %s15_s10, [#allocation3], %s848_s12, %s848_s12, %s849_s13  }
   0xd   :  { %843 = dma.done.wait [#allocation3], 4096  }
   0xe   :  { %844 = vsyncadd [#allocation3], 4294963200  ;;  %v850_v0 = vmov 0   ;;  %v73_v1 = vld [vmem:[%s1006_s1 + $0x78] sm:$0xff]  ;;  %v72_v2 = vld [vmem:[%s1006_s1 + $0x70] sm:$0xff]  ;;  %vm438_vm0 = vcmask 130112  }
   0xf   :  { %802 = vset.pattern.permute.xlu1 %v850_v0  ;;  %801 = vset.pattern.permute.xlu0 %v850_v0  ;;  %v71_v3 = vld [vmem:[%s1006_s1 + $0x68] sm:$0xff]  ;;  %v70_v4 = vld [vmem:[%s1006_s1 + $0x60] sm:$0xff]  ;;  %v69_v5 = vld [vmem:[%s1006_s1 + $0x58] sm:$0xff]  ;;  %vm445_vm1 = vcmask 195712   ;;  %vm452_vm2 = vcmask 261312   ;;  %vm459_vm3 = vcmask 326912  }
  0x10   :  { %684 = vmatprep.subr.mxu0 %v73_v1  ;;  %764 = vmatprep.subr.mxu1 %v73_v1  ;;  %v68_v6 = vld [vmem:[%s1006_s1 + $0x50] sm:$0xff]  ;;  %v67_v7 = vld [vmem:[%s1006_s1 + $0x48] sm:$0xff]  ;;  %v66_v8 = vld [vmem:[%s1006_s1 + $0x40] sm:$0xff]  ;;  %vm466_vm4 = vcmask 392512   ;;  %vm473_vm5 = vcmask 458112   ;;  %vm480_vm6 = vcmask 523712  }
  0x11   :  { %685 = vmatpush3.msra.mxu0 %v73_v1  ;;  %780 = vmatpush3.msra.mxu1 %v73_v1  ;;  %v65_v9 = vld [vmem:[%s1006_s1 + $0x38] sm:$0xff]  ;;  %v64_v10 = vld [vmem:[%s1006_s1 + $0x30] sm:$0xff]  ;;  %v63_v11 = vld [vmem:[%s1006_s1 + $0x28] sm:$0xff]  ;;  %vm487_vm7 = vcmask 589312   ;;  %vm494_vm8 = vcmask 654912   ;;  %vm501_vm9 = vcmask 720512  }
  0x12   :  { %686 = vmatprep.subr.mxu0 %v72_v2  ;;  %765 = vmatprep.subr.mxu1 %v72_v2  ;;  %v62_v12 = vld [vmem:[%s1006_s1 + $0x20] sm:$0xff]  ;;  %v61_v13 = vld [vmem:[%s1006_s1 + $0x18] sm:$0xff]  ;;  %v60_v14 = vld [vmem:[%s1006_s1 + $0x10] sm:$0xff]  ;;  %vm508_vm10 = vcmask 786112   ;;  %vm515_vm11 = vcmask 851712   ;;  %vm522_vm12 = vcmask 917312  }
  0x13   :  { %687 = vmatpush3.msra.mxu0 %v72_v2  ;;  %781 = vmatpush3.msra.mxu1 %v72_v2  ;;  %v59_v15 = vld [vmem:[%s1006_s1 + $0x8] sm:$0xff]  ;;  %v58_v16 = vld [vmem:[%s1006_s1] sm:$0xff]  ;;  %v28_v21 = vld [vmem:[#allocation2 + $0x10] sm:$0xff]  ;;  %vm529_vm13 = vcmask 982912   ;;  %vm536_vm14 = vcmask 1048512   ;;  %vm617_vm15 = vcmask 1041409  }
  0x14   :  { %688 = vmatprep.subr.mxu0 %v71_v3  ;;  %766 = vmatprep.subr.mxu1 %v71_v3  ;;  %v26_v17 = vld [vmem:[#allocation2] sm:$0xff]  ;;  %v27_v19 = vld [vmem:[#allocation2 + $0x8] sm:$0xff]  ;;  %v44_v22 = vld [vmem:[#allocation2 + $0x90] sm:$0xff]  ;;  %s851_s1 = smov [#allocation5]  }
  0x15   :  { %689 = vmatpush3.msra.mxu0 %v71_v3  ;;  %782 = vmatpush3.msra.mxu1 %v71_v3  ;;  %v42_v18 = vld [vmem:[#allocation2 + $0x80] sm:$0xff]  ;;  %v43_v20 = vld [vmem:[#allocation2 + $0x88] sm:$0xff]  ;;  %v29_v23 = vld [vmem:[#allocation2 + $0x18] sm:$0xff]  ;;  %s627_s19 = sshll.u32 %s851_s1, 4  ;;  %s628_s19 = int_to_ptr.vmem [resolvable:$true] %s627_s19 }
  0x16   :  { %690 = vmatprep.subr.mxu0 %v70_v4  ;;  %767 = vmatprep.subr.mxu1 %v70_v4  ;;  %v45_v24 = vld [vmem:[#allocation2 + $0x98] sm:$0xff]  ;;  %v30_v25 = vld [vmem:[#allocation2 + $0x20] sm:$0xff]  ;;  %v31_v27 = vld [vmem:[#allocation2 + $0x28] sm:$0xff]  ;;  %s823_s20 = scalar_lea.vmem %s628_s19, 32  ;;  %p828_p6 = scmp.lt.s32.totalorder %s628_s19, %s628_s19 }
  0x17   :  { %691 = vmatpush3.msra.mxu0 %v70_v4  ;;  %783 = vmatpush3.msra.mxu1 %v70_v4  ;;  %v46_v26 = vld [vmem:[#allocation2 + $0xa0] sm:$0xff]  ;;  %v47_v28 = vld [vmem:[#allocation2 + $0xa8] sm:$0xff]  ;;  %v32_v29 = vld [vmem:[#allocation2 + $0x30] sm:$0xff]  ;;  %p824_p5 = scmp.ne.s32.totalorder %s628_s19, %s823_s20  ;;  %p829_p7 = scmp.lt.s32.totalorder %s823_s20, %s823_s20 }
  0x18   :  { %692 = vmatprep.subr.mxu0 %v69_v5  ;;  %768 = vmatprep.subr.mxu1 %v69_v5  ;;  %v48_v30 = vld [vmem:[#allocation2 + $0xb0] sm:$0xff]  ;;  %v33_v31 = vld [vmem:[#allocation2 + $0x38] sm:$0xff]  ;;  %v34_v33 = vld [vmem:[#allocation2 + $0x40] sm:$0xff] }
  0x19   :  { %693 = vmatpush3.msra.mxu0 %v69_v5  ;;  %784 = vmatpush3.msra.mxu1 %v69_v5  ;;  %v49_v32 = vld [vmem:[#allocation2 + $0xb8] sm:$0xff]  ;;  %v50_v34 = vld [vmem:[#allocation2 + $0xc0] sm:$0xff]  ;;  %v35_v35 = vld [vmem:[#allocation2 + $0x48] sm:$0xff]  ;;  %p830_p8 = por %p829_p7, %p828_p6 }
  0x1a   :  { %694 = vmatprep.subr.mxu0 %v68_v6  ;;  %769 = vmatprep.subr.mxu1 %v68_v6  ;;  %v51_v36 = vld [vmem:[#allocation2 + $0xc8] sm:$0xff]  ;;  %v36_v37 = vld [vmem:[#allocation2 + $0x50] sm:$0xff]  ;;  %v37_v39 = vld [vmem:[#allocation2 + $0x58] sm:$0xff] }
  0x1b   :  { %695 = vmatpush3.msra.mxu0 %v68_v6  ;;  %785 = vmatpush3.msra.mxu1 %v68_v6  ;;  %v52_v38 = vld [vmem:[#allocation2 + $0xd0] sm:$0xff]  ;;  %v53_v40 = vld [vmem:[#allocation2 + $0xd8] sm:$0xff]  ;;  %v38_v41 = vld [vmem:[#allocation2 + $0x60] sm:$0xff]  ;;  %p831_p9 = pnand %p830_p8, %p824_p5 }
  0x1c   :  { %696 = vmatprep.subr.mxu0 %v67_v7  ;;  %770 = vmatprep.subr.mxu1 %v67_v7  ;;  %v54_v42 = vld [vmem:[#allocation2 + $0xe0] sm:$0xff]  ;;  %v39_v43 = vld [vmem:[#allocation2 + $0x68] sm:$0xff]  ;;  %v40_v45 = vld [vmem:[#allocation2 + $0x70] sm:$0xff] }
  0x1d   :  { %697 = vmatpush3.msra.mxu0 %v67_v7  ;;  %786 = vmatpush3.msra.mxu1 %v67_v7  ;;  %v55_v44 = vld [vmem:[#allocation2 + $0xe8] sm:$0xff]  ;;  %v56_v46 = vld [vmem:[#allocation2 + $0xf0] sm:$0xff]  ;;  %v41_v47 = vld [vmem:[#allocation2 + $0x78] sm:$0xff] }
  0x1e   :  { %698 = vmatprep.subr.mxu0 %v66_v8  ;;  %771 = vmatprep.subr.mxu1 %v66_v8  ;;  %v57_v48 = vld [vmem:[#allocation2 + $0xf8] sm:$0xff] }
  0x1f   :  { %699 = vmatpush3.msra.mxu0 %v66_v8  ;;  %787 = vmatpush3.msra.mxu1 %v66_v8 }
  0x20   :  { %700 = vmatprep.subr.mxu0 %v65_v9  ;;  %772 = vmatprep.subr.mxu1 %v65_v9 }
  0x21   :  { %701 = vmatpush3.msra.mxu0 %v65_v9  ;;  %788 = vmatpush3.msra.mxu1 %v65_v9 }
  0x22   :  { %702 = vmatprep.subr.mxu0 %v64_v10  ;;  %773 = vmatprep.subr.mxu1 %v64_v10 }
  0x23   :  { %703 = vmatpush3.msra.mxu0 %v64_v10  ;;  %789 = vmatpush3.msra.mxu1 %v64_v10 }
  0x24   :  { %704 = vmatprep.subr.mxu0 %v63_v11  ;;  %774 = vmatprep.subr.mxu1 %v63_v11 }
  0x25   :  { %705 = vmatpush3.msra.mxu0 %v63_v11  ;;  %790 = vmatpush3.msra.mxu1 %v63_v11 }
  0x26   :  { %706 = vmatprep.subr.mxu0 %v62_v12  ;;  %775 = vmatprep.subr.mxu1 %v62_v12 }
  0x27   :  { %707 = vmatpush3.msra.mxu0 %v62_v12  ;;  %791 = vmatpush3.msra.mxu1 %v62_v12 }
  0x28   :  { %708 = vmatprep.subr.mxu0 %v61_v13  ;;  %776 = vmatprep.subr.mxu1 %v61_v13 }
  0x29   :  { %709 = vmatpush3.msra.mxu0 %v61_v13  ;;  %792 = vmatpush3.msra.mxu1 %v61_v13 }
  0x2a   :  { %710 = vmatprep.subr.mxu0 %v60_v14  ;;  %777 = vmatprep.subr.mxu1 %v60_v14 }
  0x2b   :  { %711 = vmatpush3.msra.mxu0 %v60_v14  ;;  %793 = vmatpush3.msra.mxu1 %v60_v14 }
  0x2c   :  { %712 = vmatprep.subr.mxu0 %v59_v15  ;;  %778 = vmatprep.subr.mxu1 %v59_v15 }
  0x2d   :  { %713 = vmatpush3.msra.mxu0 %v59_v15  ;;  %794 = vmatpush3.msra.mxu1 %v59_v15 }
  0x2e   :  { %714 = vmatprep.subr.mxu0 %v58_v16  ;;  %779 = vmatprep.subr.mxu1 %v58_v16 }
  0x2f   :  { %715 = vmatpush3.msra.mxu0 %v58_v16  ;;  %795 = vmatpush3.msra.mxu1 %v58_v16 }
  0x30   :  { %716 = vmatprep.mubr.f32.mxu0 %v26_v17  ;;  %740 = vmatprep.mubr.f32.mxu1 %v42_v18 }
  0x31   :  { %717 = vmatmul.mubr.f32.vlgmr.msra.gmra.mxu0 %v27_v19  ;;  %741 = vmatmul.mubr.f32.vlgmr.msra.gmra.mxu1 %v43_v20 }
  0x32   :  { %719 = vmatprep.mubr.f32.mxu0 %v28_v21  ;;  %743 = vmatprep.mubr.f32.mxu1 %v44_v22 }
  0x35   :  { %720 = vmatmul.mubr.f32.gmra.mxu0 %v29_v23  ;;  %744 = vmatmul.mubr.f32.gmra.mxu1 %v45_v24 }
  0x36   :  { %722 = vmatprep.mubr.f32.mxu0 %v30_v25  ;;  %746 = vmatprep.mubr.f32.mxu1 %v46_v26 }
  0x39   :  { %723 = vmatmul.mubr.f32.gmra.mxu0 %v31_v27  ;;  %747 = vmatmul.mubr.f32.gmra.mxu1 %v47_v28  ;;  %v427_v27 = vlaneseq }
  0x3a   :  { %725 = vmatprep.mubr.f32.mxu0 %v32_v29  ;;  %749 = vmatprep.mubr.f32.mxu1 %v48_v30 }
  0x3b   :  { %v926_v30 = vand.u32 127, %v427_v27 }
  0x3d   :  { %726 = vmatmul.mubr.f32.gmra.mxu0 %v33_v31  ;;  %750 = vmatmul.mubr.f32.gmra.mxu1 %v49_v32 }
  0x3e   :  { %728 = vmatprep.mubr.f32.mxu0 %v34_v33  ;;  %752 = vmatprep.mubr.f32.mxu1 %v50_v34  ;;  %v440_v33 = vadd.s32 4294967280, %v926_v30  ;;  %v933_v34 = vshrl.u32 %v427_v27, 7 }
  0x41   :  { %729 = vmatmul.mubr.f32.gmra.mxu0 %v35_v35  ;;  %753 = vmatmul.mubr.f32.gmra.mxu1 %v51_v36  ;;  %v433_v35 = vadd.s32 4294967288, %v926_v30 }
  0x42   :  { %731 = vmatprep.mubr.f32.mxu0 %v36_v37  ;;  %755 = vmatprep.mubr.f32.mxu1 %v52_v38  ;;  %v431_v38 = vsub.s32 %v926_v30, %v933_v34 }
  0x45   :  { %732 = vmatmul.mubr.f32.gmra.mxu0 %v37_v39  ;;  %756 = vmatmul.mubr.f32.gmra.mxu1 %v53_v40  ;;  %v443_v39 = vsub.s32 %v440_v33, %v933_v34  ;;  %v454_v40 = vadd.s32 4294967264, %v926_v30 }
  0x46   :  { %734 = vmatprep.mubr.f32.mxu0 %v38_v41  ;;  %758 = vmatprep.mubr.f32.mxu1 %v54_v42  ;;  %v436_v41 = vsub.s32 %v433_v35, %v933_v34  ;;  %v447_v42 = vadd.s32 4294967272, %v926_v30 }
  0x49   :  { %735 = vmatmul.mubr.f32.gmra.mxu0 %v39_v43  ;;  %759 = vmatmul.mubr.f32.gmra.mxu1 %v55_v44  ;;  %v461_v43 = vadd.s32 4294967256, %v926_v30 }
  0x4a   :  { %737 = vmatprep.mubr.f32.mxu0 %v40_v45  ;;  %761 = vmatprep.mubr.f32.mxu1 %v56_v46 }
  0x4d   :  { %738 = vmatmul.mubr.f32.gmra.mxu0 %v41_v47  ;;  %762 = vmatmul.mubr.f32.gmra.mxu1 %v57_v48  ;;  %v468_v48 = vadd.s32 4294967248, %v926_v30 }
  0xf1   :  { %v718_v49 = vpop.f32.mrf.mxu0  ;;  %v742_v50 = vpop.f32.mrf.mxu1 }
  0xf2   :  { %383 = vperm.xlu1 %802, %v742_v50   ;;  %335 = vperm.xlu0 %801, %v718_v49  }
  0xf3   :  { %v140_v51 = vpop.f32.mrf.mxu0  ;;  %v220_v53 = vpop.f32.mrf.mxu1 }
  0xf5   :  { %v721_v52 = vpop.f32.mrf.mxu0  ;;  %v745_v54 = vpop.f32.mrf.mxu1 }
  0xf6   :  { %332 = vperm.xlu0 %801, %v140_v51   ;;  %341 = vperm.xlu1 %802, %v721_v52   ;;  %v457_v51 = vsub.s32 %v454_v40, %v933_v34 }
  0xf7   :  { %v150_v55 = vpop.f32.mrf.mxu0  ;;  %v230_v56 = vpop.f32.mrf.mxu1 }
  0xf9   :  { %v724_v57 = vpop.f32.mrf.mxu0  ;;  %v748_v59 = vpop.f32.mrf.mxu1 }
  0xfa   :  { %380 = vperm.xlu0 %801, %v220_v53   ;;  %389 = vperm.xlu1 %802, %v745_v54   ;;  %v450_v54 = vsub.s32 %v447_v42, %v933_v34 }
  0xfb   :  { %v160_v58 = vpop.f32.mrf.mxu0  ;;  %v240_v60 = vpop.f32.mrf.mxu1 }
  0xfd   :  { %v727_v61 = vpop.f32.mrf.mxu0  ;;  %v751_v63 = vpop.f32.mrf.mxu1 }
  0xfe   :  { %386 = vperm.xlu0 %801, %v230_v56   ;;  %338 = vperm.xlu1 %802, %v150_v55   ;;  %v464_v55 = vsub.s32 %v461_v43, %v933_v34  ;;  %v475_v56 = vadd.s32 4294967240, %v926_v30 }
  0xff   :  { %v170_v62 = vpop.f32.mrf.mxu0  ;;  %v250_v0 = vpop.f32.mrf.mxu1 }
 0x101   :  { %v730_v1 = vpop.f32.mrf.mxu0  ;;  %v754_v3 = vpop.f32.mrf.mxu1 }
 0x102   :  { %347 = vperm.xlu1 %802, %v724_v57   ;;  %344 = vperm.xlu0 %801, %v160_v58   ;;  %v482_v57 = vadd.s32 4294967232, %v926_v30 }
 0x103   :  { %v180_v2 = vpop.f32.mrf.mxu0  ;;  %v260_v4 = vpop.f32.mrf.mxu1 }
 0x105   :  { %v733_v5 = vpop.f32.mrf.mxu0  ;;  %v757_v7 = vpop.f32.mrf.mxu1 }
 0x106   :  { %395 = vperm.xlu1 %802, %v748_v59   ;;  %392 = vperm.xlu0 %801, %v240_v60  }
 0x107   :  { %v190_v6 = vpop.f32.mrf.mxu0  ;;  %v270_v8 = vpop.f32.mrf.mxu1 }
 0x109   :  { %v736_v9 = vpop.f32.mrf.mxu0  ;;  %v760_v10 = vpop.f32.mrf.mxu1 }
 0x10a   :  { %353 = vperm.xlu1 %802, %v727_v61   ;;  %350 = vperm.xlu0 %801, %v170_v62   ;;  %v471_v62 = vsub.s32 %v468_v48, %v933_v34 }
 0x10b   :  { %v200_v11 = vpop.f32.mrf.mxu0  ;;  %v280_v12 = vpop.f32.mrf.mxu1 }
 0x10d   :  { %v739_v13 = vpop.f32.mrf.mxu0  ;;  %v763_v14 = vpop.f32.mrf.mxu1 }
 0x10e   :  { %401 = vperm.xlu1 %802, %v751_v63   ;;  %398 = vperm.xlu0 %801, %v250_v0  }
 0x10f   :  { %v210_v15 = vpop.f32.mrf.mxu0  ;;  %v290_v16 = vpop.f32.mrf.mxu1 }
 0x112   :  { %359 = vperm.xlu1 %802, %v730_v1   ;;  %356 = vperm.xlu0 %801, %v180_v2  }
 0x116   :  { %407 = vperm.xlu1 %802, %v754_v3   ;;  %404 = vperm.xlu0 %801, %v260_v4  }
 0x11a   :  { %365 = vperm.xlu1 %802, %v733_v5   ;;  %362 = vperm.xlu0 %801, %v190_v6   ;;  %v478_v5 = vsub.s32 %v475_v56, %v933_v34  ;;  %v489_v6 = vadd.s32 4294967224, %v926_v30 }
 0x11e   :  { %413 = vperm.xlu1 %802, %v757_v7   ;;  %410 = vperm.xlu0 %801, %v270_v8   ;;  %v485_v7 = vsub.s32 %v482_v57, %v933_v34 }
 0x122   :  { %419 = vperm.xlu1 %802, %v760_v10   ;;  %371 = vperm.xlu0 %801, %v736_v9   ;;  %v496_v9 = vadd.s32 4294967216, %v926_v30 }
 0x126   :  { %416 = vperm.xlu1 %802, %v280_v12   ;;  %368 = vperm.xlu0 %801, %v200_v11  }
 0x12a   :  { %422 = vperm.xlu1 %802, %v290_v16   ;;  %374 = vperm.xlu0 %801, %v210_v15  }
 0x12e   :  { %425 = vperm.xlu1 %802, %v763_v14   ;;  %377 = vperm.xlu0 %801, %v739_v13  }
 0x16d   :  { %v384_v17 = vpop.permute.xlu1 %383  ;;  %v336_v18 = vpop.permute.xlu0 %335 }
 0x16e   :  { %v545_v52 = vrot.slane %v384_v17, %v436_v41  ;;  %v437_v53 = vrot.slane %v336_v18, %v436_v41 }
 0x171   :  { %v333_v19 = vpop.permute.xlu0 %332  ;;  %v918_v20 = vpop.permute.xlu1 %341 }
 0x172   :  { %v432_v46 = vrot.slane %v333_v19, %v431_v38  ;;  %v451_v3 = vrot.slane %v918_v20, %v450_v54  ;;  %v492_v19 = vsub.s32 %v489_v6, %v933_v34  ;;  %v503_v20 = vadd.s32 4294967208, %v926_v30 }
 0x174   :  { %v439_v60 = vsel %vm438_vm0, %v437_v53, %v432_v46 }
 0x175   :  { %v381_v21 = vpop.permute.xlu0 %380  ;;  %v920_v22 = vpop.permute.xlu1 %389 }
 0x176   :  { %v541_v47 = vrot.slane %v381_v21, %v431_v38  ;;  %v555_v4 = vrot.slane %v920_v22, %v450_v54  ;;  %v499_v21 = vsub.s32 %v496_v9, %v933_v34 }
 0x178   :  { %v546_v61 = vsel %vm438_vm0, %v545_v52, %v541_v47 }
 0x179   :  { %v387_v23 = vpop.permute.xlu0 %386  ;;  %v339_v24 = vpop.permute.xlu1 %338 }
 0x17a   :  { %v550_v49 = vrot.slane %v387_v23, %v443_v39  ;;  %v444_v50 = vrot.slane %v339_v24, %v443_v39  ;;  %v510_v24 = vadd.s32 4294967200, %v926_v30 }
 0x17c   :  { %v551_v63 = vsel %vm445_vm1, %v550_v49, %v546_v61  ;;  %v446_v0 = vsel %vm445_vm1, %v444_v50, %v439_v60  ;;  %v513_v40 = vsub.s32 %v510_v24, %v933_v34  ;;  %v517_v49 = vadd.s32 4294967192, %v926_v30 }
 0x17d   :  { %v922_v25 = vpop.permute.xlu1 %347  ;;  %v345_v26 = vpop.permute.xlu0 %344  ;;  %v453_v12 = vsel %vm452_vm2, %v451_v3, %v446_v0  ;;  %v556_v14 = vsel %vm452_vm2, %v555_v4, %v551_v63 }
 0x17e   :  { %v458_v1 = vrot.slane %v345_v26, %v457_v51  ;;  %v465_v11 = vrot.slane %v922_v25, %v464_v55  ;;  %v520_v61 = vsub.s32 %v517_v49, %v933_v34 }
 0x180   :  { %v460_v15 = vsel %vm459_vm3, %v458_v1, %v453_v12 }
 0x181   :  { %v924_v28 = vpop.permute.xlu1 %395  ;;  %v393_v29 = vpop.permute.xlu0 %392  ;;  %v467_v26 = vsel %vm466_vm4, %v465_v11, %v460_v15 }
 0x182   :  { %v560_v2 = vrot.slane %v393_v29, %v457_v51  ;;  %v565_v13 = vrot.slane %v924_v28, %v464_v55 }
 0x184   :  { %v561_v16 = vsel %vm459_vm3, %v560_v2, %v556_v14 }
 0x185   :  { %v928_v31 = vpop.permute.xlu1 %353  ;;  %v930_v32 = vpop.permute.xlu0 %350  ;;  %v566_v28 = vsel %vm466_vm4, %v565_v13, %v561_v16 }
 0x186   :  { %v472_v17 = vrot.slane %v930_v32, %v471_v62  ;;  %v479_v25 = vrot.slane %v928_v31, %v478_v5  ;;  %v524_v31 = vadd.s32 4294967184, %v926_v30 }
 0x188   :  { %v474_v29 = vsel %vm473_vm5, %v472_v17, %v467_v26  ;;  %v527_v52 = vsub.s32 %v524_v31, %v933_v34 }
 0x189   :  { %v936_v36 = vpop.permute.xlu1 %401  ;;  %v938_v37 = vpop.permute.xlu0 %398 }
 0x18a   :  { %v570_v18 = vrot.slane %v938_v37, %v471_v62  ;;  %v575_v27 = vrot.slane %v936_v36, %v478_v5  ;;  %v506_v37 = vsub.s32 %v503_v20, %v933_v34  ;;  %v481_v36 = vsel %vm480_vm6, %v479_v25, %v474_v29 }
 0x18c   :  { %v571_v32 = vsel %vm473_vm5, %v570_v18, %v566_v28 }
 0x18d   :  { %v947_v44 = vpop.permute.xlu1 %359  ;;  %v949_v45 = vpop.permute.xlu0 %356  ;;  %v576_v43 = vsel %vm480_vm6, %v575_v27, %v571_v32 }
 0x18e   :  { %v486_v33 = vrot.slane %v949_v45, %v485_v7  ;;  %v493_v41 = vrot.slane %v947_v44, %v492_v19  ;;  %v531_v44 = vadd.s32 4294967176, %v926_v30 }
 0x190   :  { %v488_v45 = vsel %vm487_vm7, %v486_v33, %v481_v36  ;;  %v534_v1 = vsub.s32 %v531_v44, %v933_v34 }
 0x191   :  { %v957_v58 = vpop.permute.xlu1 %407  ;;  %v405_v59 = vpop.permute.xlu0 %404  ;;  %v495_v54 = vsel %vm494_vm8, %v493_v41, %v488_v45 }
 0x192   :  { %v580_v35 = vrot.slane %v405_v59, %v485_v7  ;;  %v585_v42 = vrot.slane %v957_v58, %v492_v19 }
 0x194   :  { %v581_v46 = vsel %vm487_vm7, %v580_v35, %v576_v43 }
 0x195   :  { %v965_v8 = vpop.permute.xlu1 %365  ;;  %v363_v10 = vpop.permute.xlu0 %362  ;;  %v586_v56 = vsel %vm494_vm8, %v585_v42, %v581_v46 }
 0x196   :  { %v500_v47 = vrot.slane %v363_v10, %v499_v21  ;;  %v507_v53 = vrot.slane %v965_v8, %v506_v37 }
 0x198   :  { %v502_v57 = vsel %vm501_vm9, %v500_v47, %v495_v54 }
 0x199   :  { %v414_v22 = vpop.permute.xlu1 %413  ;;  %v411_v23 = vpop.permute.xlu0 %410  ;;  %v509_v30 = vsel %vm508_vm10, %v507_v53, %v502_v57 }
 0x19a   :  { %v590_v48 = vrot.slane %v411_v23, %v499_v21  ;;  %v595_v55 = vrot.slane %v414_v22, %v506_v37 }
 0x19c   :  { %v591_v58 = vsel %vm501_vm9, %v590_v48, %v586_v56 }
 0x19d   :  { %v420_v38 = vpop.permute.xlu1 %419  ;;  %v372_v39 = vpop.permute.xlu0 %371  ;;  %v596_v0 = vsel %vm508_vm10, %v595_v55, %v591_v58 }
 0x19e   :  { %v605_v6 = vrot.slane %v420_v38, %v520_v61  ;;  %v521_v7 = vrot.slane %v372_v39, %v520_v61 }
 0x1a1   :  { %v417_v50 = vpop.permute.xlu1 %416  ;;  %v369_v51 = vpop.permute.xlu0 %368 }
 0x1a2   :  { %v600_v59 = vrot.slane %v417_v50, %v513_v40  ;;  %v514_v60 = vrot.slane %v369_v51, %v513_v40 }
 0x1a4   :  { %v601_v2 = vsel %vm515_vm11, %v600_v59, %v596_v0  ;;  %v516_v3 = vsel %vm515_vm11, %v514_v60, %v509_v30 }
 0x1a5   :  { %v423_v62 = vpop.permute.xlu1 %422  ;;  %v375_v63 = vpop.permute.xlu0 %374  ;;  %v606_v10 = vsel %vm522_vm12, %v605_v6, %v601_v2  ;;  %v523_v11 = vsel %vm522_vm12, %v521_v7, %v516_v3 }
 0x1a6   :  { %v610_v4 = vrot.slane %v423_v62, %v527_v52  ;;  %v528_v5 = vrot.slane %v375_v63, %v527_v52 }
 0x1a8   :  { %v611_v34 = vsel %vm529_vm13, %v610_v4, %v606_v10  ;;  %v530_v14 = vsel %vm529_vm13, %v528_v5, %v523_v11 }
 0x1a9   :  { %v426_v8 = vpop.permute.xlu1 %425  ;;  %v378_v9 = vpop.permute.xlu0 %377 }
 0x1aa   :  { %v615_v12 = vrot.slane %v426_v8, %v534_v1  ;;  %v535_v13 = vrot.slane %v378_v9, %v534_v1 }
 0x1ac   :  { %v537_v15 = vsel %vm536_vm14, %v535_v13, %v530_v14  ;;  %v616_v16 = vsel %vm536_vm14, %v615_v12, %v611_v34 }
 0x1ad   :  { %v618_v17 = vsel %vm617_vm15, %v616_v16, %v537_v15 }
 0x1ae   :  { %620 = vst [vmem:[#allocation5] sm:$0x3] %v618_v17 }
 0x1af   :  { %834 = shalt.err (!%p831_p9)
}
 0x1b0   :  { %630 = dma.vmem_to_hbm [thread:$0]  %s628_s19, 32, %s1007_s2, [#allocation4]  }
 0x1b1   :  { %845 = dma.done.wait [#allocation4], 32  }
 0x1b2   :  { %846 = vsyncadd [#allocation4], 4294967264 }
 0x1b3   :  { %634 = vsyncpa [#allocation3], 1 }
 0x1b4   :  { %635 = vsyncpa [#allocation4], 1 }

// kernel: tpu_custom_call.1
= control target key start
LH: loop header
LB: loop body
LE: loop exit
PB: predicated region body
PF: predicated region fallthrough
CT: control target
= control target key end

     0   :  { %vm127_vm0 = vcmask 261120   ;;  %s2294_s0 = inlined_call_operand.vmem [shape: f32[300,32], index: 0, kind: input, shape index: {}]   ;;  %s2295_s1 = inlined_call_operand.vmem [shape: f32[32,1], index: 1, kind: input, shape index: {}]   ;;  %s2296_s2 = inlined_call_operand.vmem [shape: f32[300,1], index: 2, kind: input, shape index: {}]   ;;  %s2297_s3 = inlined_call_operand.hbm [shape: f32[1,1,1], index: 3, kind: output, shape index: {}]  }
   0x1   :  { %v126_v0 = vld [vmem:[%s2295_s1 + $0x18] sm:$0xff]  ;;  %v125_v1 = vld [vmem:[%s2295_s1 + $0x10] sm:$0xff]  ;;  %v124_v2 = vld [vmem:[%s2295_s1 + $0x8] sm:$0xff] }
   0x2   :  { %1404 = vmatprep.subr.mxu0 %v126_v0  ;;  %1469 = vmatprep.subr.mxu1 %v126_v0  ;;  %v123_v3 = vld [vmem:[%s2295_s1] sm:$0xff]  ;;  %v86_v5 = vld [vmem:[%s2294_s0 + $0x8] sm:$0xff]  ;;  %v87_v7 = vld [vmem:[%s2294_s0 + $0x10] sm:$0xff] }
   0x3   :  { %1405 = vmatpush3.msra.mxu0 %v126_v0  ;;  %1473 = vmatpush3.msra.mxu1 %v126_v0  ;;  %v85_v4 = vld [vmem:[%s2294_s0] sm:$0xff]  ;;  %v106_v8 = vld [vmem:[%s2294_s0 + $0xa8] sm:$0xff]  ;;  %v107_v9 = vld [vmem:[%s2294_s0 + $0xb0] sm:$0xff] }
   0x4   :  { %1406 = vmatprep.subr.mxu0 %v125_v1  ;;  %1470 = vmatprep.subr.mxu1 %v125_v1  ;;  %v105_v6 = vld [vmem:[%s2294_s0 + $0xa0] sm:$0xff]  ;;  %v88_v10 = vld [vmem:[%s2294_s0 + $0x18] sm:$0xff]  ;;  %v90_v14 = vld [vmem:[%s2294_s0 + $0x28] sm:$0xff] }
   0x5   :  { %1407 = vmatpush3.msra.mxu0 %v125_v1  ;;  %1474 = vmatpush3.msra.mxu1 %v125_v1  ;;  %v89_v11 = vld [vmem:[%s2294_s0 + $0x20] sm:$0xff]  ;;  %v108_v12 = vld [vmem:[%s2294_s0 + $0xb8] sm:$0xff] }
   0x6   :  { %1408 = vmatprep.subr.mxu0 %v124_v2  ;;  %1471 = vmatprep.subr.mxu1 %v124_v2  ;;  %v109_v13 = vld [vmem:[%s2294_s0 + $0xc0] sm:$0xff] }
   0x7   :  { %1409 = vmatpush3.msra.mxu0 %v124_v2  ;;  %1475 = vmatpush3.msra.mxu1 %v124_v2 }
   0x8   :  { %1410 = vmatprep.subr.mxu0 %v123_v3  ;;  %1412 = vmatprep.mubr.msk.f32.mxu0 %vm127_vm0, %v85_v4 }
   0x9   :  { %1411 = vmatpush3.msra.mxu0 %v123_v3  ;;  %1472 = vmatprep.subr.mxu1 %v123_v3 }
   0xa   :  { %1413 = vmatmul.mubr.msk.f32.vlgmr.msra.gmra.mxu0 %vm127_vm0, %v86_v5  ;;  %1476 = vmatpush3.msra.mxu1 %v123_v3 }
   0xb   :  { %1442 = vmatprep.mubr.msk.f32.mxu1 %vm127_vm0, %v105_v6  ;;  %1415 = vmatprep.mubr.msk.f32.mxu0 %vm127_vm0, %v87_v7 }
   0xc   :  { %1443 = vmatmul.mubr.msk.f32.vlgmr.msra.gmra.mxu1 %vm127_vm0, %v106_v8 }
   0xd   :  { %1445 = vmatprep.mubr.msk.f32.mxu1 %vm127_vm0, %v107_v9 }
   0xe   :  { %1416 = vmatmul.mubr.msk.f32.gmra.mxu0 %vm127_vm0, %v88_v10 }
   0xf   :  { %1418 = vmatprep.mubr.msk.f32.mxu0 %vm127_vm0, %v89_v11 }
  0x10   :  { %8 = vsyncpa [#allocation3], 0  ;;  %1446 = vmatmul.mubr.msk.f32.gmra.mxu1 %vm127_vm0, %v108_v12  ;;  %v91_v15 = vld [vmem:[%s2294_s0 + $0x30] sm:$0xff]  ;;  %v110_v16 = vld [vmem:[%s2294_s0 + $0xc8] sm:$0xff]  ;;  %vm1115_vm1 = vcmask 7168   ;;  %vm83_vm3 = vcmask 0  }
  0x11   :  { %1448 = vmatprep.mubr.msk.f32.mxu1 %vm127_vm0, %v109_v13  ;;  %v111_v17 = vld [vmem:[%s2294_s0 + $0xd0] sm:$0xff]  ;;  %v92_v18 = vld [vmem:[%s2294_s0 + $0x38] sm:$0xff]  ;;  %v93_v19 = vld [vmem:[%s2294_s0 + $0x40] sm:$0xff] }
  0x12   :  { %1419 = vmatmul.mubr.msk.f32.gmra.mxu0 %vm127_vm0, %v90_v14  ;;  %v112_v20 = vld [vmem:[%s2294_s0 + $0xd8] sm:$0xff]  ;;  %v113_v21 = vld [vmem:[%s2294_s0 + $0xe0] sm:$0xff]  ;;  %v94_v22 = vld [vmem:[%s2294_s0 + $0x48] sm:$0xff] }
  0x13   :  { %1421 = vmatprep.mubr.msk.f32.mxu0 %vm127_vm0, %v91_v15  ;;  %v95_v23 = vld [vmem:[%s2294_s0 + $0x50] sm:$0xff]  ;;  %v114_v24 = vld [vmem:[%s2294_s0 + $0xe8] sm:$0xff]  ;;  %v96_v26 = vld [vmem:[%s2294_s0 + $0x58] sm:$0xff] }
  0x14   :  { %1449 = vmatmul.mubr.msk.f32.gmra.mxu1 %vm127_vm0, %v110_v16  ;;  %v115_v25 = vld [vmem:[%s2294_s0 + $0xf0] sm:$0xff]  ;;  %v97_v27 = vld [vmem:[%s2294_s0 + $0x60] sm:$0xff]  ;;  %v116_v28 = vld [vmem:[%s2294_s0 + $0xf8] sm:$0xff] }
  0x15   :  { %1451 = vmatprep.mubr.msk.f32.mxu1 %vm127_vm0, %v111_v17  ;;  %v117_v29 = vld [vmem:[%s2294_s0 + $0x100] sm:$0xff]  ;;  %v98_v30 = vld [vmem:[%s2294_s0 + $0x68] sm:$0xff]  ;;  %v99_v31 = vld [vmem:[%s2294_s0 + $0x70] sm:$0xff] }
  0x16   :  { %1422 = vmatmul.mubr.msk.f32.gmra.mxu0 %vm127_vm0, %v92_v18  ;;  %v118_v32 = vld [vmem:[%s2294_s0 + $0x108] sm:$0xff]  ;;  %v119_v33 = vld [vmem:[%s2294_s0 + $0x110] sm:$0xff]  ;;  %v100_v34 = vld [vmem:[%s2294_s0 + $0x78] sm:$0xff] }
  0x17   :  { %1424 = vmatprep.mubr.msk.f32.mxu0 %vm127_vm0, %v93_v19  ;;  %v101_v35 = vld [vmem:[%s2294_s0 + $0x80] sm:$0xff]  ;;  %v120_v36 = vld [vmem:[%s2294_s0 + $0x118] sm:$0xff]  ;;  %v102_v38 = vld [vmem:[%s2294_s0 + $0x88] sm:$0xff] }
  0x18   :  { %1452 = vmatmul.mubr.msk.f32.gmra.mxu1 %vm127_vm0, %v112_v20  ;;  %v121_v37 = vld [vmem:[%s2294_s0 + $0x120] sm:$0xff]  ;;  %v103_v39 = vld [vmem:[%s2294_s0 + $0x90] sm:$0xff]  ;;  %v122_v40 = vld [vmem:[%s2294_s0 + $0x128] sm:$0xff] }
  0x19   :  { %1454 = vmatprep.mubr.msk.f32.mxu1 %vm127_vm0, %v113_v21  ;;  %v104_v41 = vld [vmem:[%s2294_s0 + $0x98] sm:$0xff]  ;;  %v497_v43 = vld [vmem:[%s2296_s2] sm:$0xff]  ;;  %v498_v44 = vld [vmem:[%s2296_s2 + $0x8] sm:$0xff] }
  0x1a   :  { %1425 = vmatmul.mubr.msk.f32.gmra.mxu0 %vm127_vm0, %v94_v22  ;;  %v499_v46 = vld [vmem:[%s2296_s2 + $0x10] sm:$0xff]  ;;  %v535_v47 = vsub.f32 0.0, %v497_v43  ;;  %v536_v48 = vsub.f32 0.0, %v498_v44  ;;  %v500_v53 = vld [vmem:[%s2296_s2 + $0x18] sm:$0xff]  ;;  %v501_v58 = vld [vmem:[%s2296_s2 + $0x20] sm:$0xff] }
  0x1b   :  { %1427 = vmatprep.mubr.msk.f32.mxu0 %vm127_vm0, %v95_v23  ;;  %v537_v50 = vsub.f32 0.0, %v499_v46  ;;  %v538_v57 = vsub.f32 0.0, %v500_v53  ;;  %v539_v63 = vsub.f32 0.0, %v501_v58  ;;  %v502_v3 = vld [vmem:[%s2296_s2 + $0x28] sm:$0xff]  ;;  %v503_v7 = vld [vmem:[%s2296_s2 + $0x30] sm:$0xff]  ;;  %v504_v18 = vld [vmem:[%s2296_s2 + $0x38] sm:$0xff] }
  0x1c   :  { %1455 = vmatmul.mubr.msk.f32.gmra.mxu1 %vm127_vm0, %v114_v24  ;;  %v540_v10 = vsub.f32 0.0, %v502_v3  ;;  %v541_v12 = vsub.f32 0.0, %v503_v7  ;;  %v505_v22 = vld [vmem:[%s2296_s2 + $0x40] sm:$0xff]  ;;  %v542_v24 = vsub.f32 0.0, %v504_v18  ;;  %v1940_v18 = vld [vmem:[%s2296_s2 + $0xc8] sm:$0xff] }
  0x1d   :  { %1457 = vmatprep.mubr.msk.f32.mxu1 %vm127_vm0, %v115_v25 }
  0x1e   :  { %1428 = vmatmul.mubr.msk.f32.gmra.mxu0 %vm127_vm0, %v96_v26 }
  0x1f   :  { %1430 = vmatprep.mubr.msk.f32.mxu0 %vm127_vm0, %v97_v27  ;;  %v543_v27 = vsub.f32 0.0, %v505_v22 }
  0x20   :  { %1458 = vmatmul.mubr.msk.f32.gmra.mxu1 %vm127_vm0, %v116_v28 }
  0x21   :  { %1460 = vmatprep.mubr.msk.f32.mxu1 %vm127_vm0, %v117_v29 }
  0x22   :  { %1431 = vmatmul.mubr.msk.f32.gmra.mxu0 %vm127_vm0, %v98_v30 }
  0x23   :  { %1433 = vmatprep.mubr.msk.f32.mxu0 %vm127_vm0, %v99_v31 }
  0x24   :  { %1461 = vmatmul.mubr.msk.f32.gmra.mxu1 %vm127_vm0, %v118_v32 }
  0x25   :  { %1463 = vmatprep.mubr.msk.f32.mxu1 %vm127_vm0, %v119_v33  ;;  %v506_v33 = vld [vmem:[%s2296_s2 + $0x48] sm:$0xff] }
  0x26   :  { %1434 = vmatmul.mubr.msk.f32.gmra.mxu0 %vm127_vm0, %v100_v34 }
  0x27   :  { %1436 = vmatprep.mubr.msk.f32.mxu0 %vm127_vm0, %v101_v35 }
  0x28   :  { %1464 = vmatmul.mubr.msk.f32.gmra.mxu1 %vm127_vm0, %v120_v36 }
  0x29   :  { %1466 = vmatprep.mubr.msk.f32.mxu1 %vm127_vm0, %v121_v37  ;;  %v507_v37 = vld [vmem:[%s2296_s2 + $0x50] sm:$0xff] }
  0x2a   :  { %1437 = vmatmul.mubr.msk.f32.gmra.mxu0 %vm127_vm0, %v102_v38  ;;  %v545_v44 = vsub.f32 0.0, %v507_v37  ;;  %v1970_v37 = vld [vmem:[%s2296_s2 + $0xe8] sm:$0xff] }
  0x2b   :  { %1439 = vmatprep.mubr.msk.f32.mxu0 %vm127_vm0, %v103_v39  ;;  %v544_v39 = vsub.f32 0.0, %v506_v33 }
  0x2c   :  { %1467 = vmatmul.mubr.msk.f32.gmra.mxu1 %vm127_vm0, %v122_v40 }
  0x2e   :  { %1440 = vmatmul.mubr.msk.f32.gmra.mxu0 %vm127_vm0, %v104_v41 }
  0xca   :  { %v1414_v42 = vpop.f32.mrf.mxu0 }
  0xcb   :  { %v1855_v54 = vmul.f32 %v1414_v42, %v536_v48 }
  0xcc   :  { %v308_v45 = vpop.f32.mrf.mxu0 }
  0xcd   :  { %v1850_v52 = vmul.f32 %v535_v47, %v308_v45  ;;  %v650_v60 = vand.u32 2147483647, %v1855_v54 }
  0xce   :  { %v1417_v49 = vpop.f32.mrf.mxu0 }
  0xcf   :  { %v649_v59 = vand.u32 2147483647, %v1850_v52  ;;  %v1865_v0 = vmul.f32 %v1417_v49, %v538_v57  ;;  %v688_v2 = vsub.f32 0.0, %v650_v60  ;;  %v1444_v49 = vpop.f32.mrf.mxu1 }
  0xd0   :  { %v318_v51 = vpop.f32.mrf.mxu0 }
  0xd1   :  { %v1857_v55 = vmul.f32 %v537_v50, %v318_v51  ;;  %v687_v1 = vsub.f32 0.0, %v649_v59  ;;  %v652_v8 = vand.u32 2147483647, %v1865_v0  ;;  %v727_v11 = vmul.f32 1.442695, %v688_v2 }
  0xd2   :  { %v1420_v56 = vpop.f32.mrf.mxu0 }
  0xd3   :  { %v651_v61 = vand.u32 2147483647, %v1857_v55  ;;  %v725_v9 = vmul.f32 1.442695, %v687_v1  ;;  %v690_v16 = vsub.f32 0.0, %v652_v8  ;;  %v1877_v17 = vmul.f32 %v1420_v56, %v540_v10  ;;  %v508_v56 = vld [vmem:[%s2296_s2 + $0x58] sm:$0xff] }
  0xd4   :  { %v328_v62 = vpop.f32.mrf.mxu0  ;;  %v510_v10 = vld [vmem:[%s2296_s2 + $0x68] sm:$0xff] }
  0xd5   :  { %v689_v4 = vsub.f32 0.0, %v651_v61  ;;  %v1870_v5 = vmul.f32 %v539_v63, %v328_v62  ;;  %1481 = vpow2.f32 %v725_v9  ;;  %v731_v23 = vmul.f32 1.442695, %v690_v16  ;;  %v1908_v61 = vpop.f32.mrf.mxu1 }
  0xd6   :  { %v1423_v6 = vpop.f32.mrf.mxu0  ;;  %1483 = vpow2.f32 %v727_v11  ;;  %v654_v25 = vand.u32 2147483647, %v1877_v17  ;;  %v546_v63 = vsub.f32 0.0, %v508_v56  ;;  %v1925_v11 = vld [vmem:[%s2296_s2 + $0xa0] sm:$0xff]  ;;  %v512_v56 = vld [vmem:[%s2296_s2 + $0x78] sm:$0xff] }
  0xd7   :  { %v729_v13 = vmul.f32 1.442695, %v689_v4  ;;  %v653_v14 = vand.u32 2147483647, %v1870_v5  ;;  %v1889_v30 = vmul.f32 %v1423_v6, %v542_v24  ;;  %v518_v6 = vld [vmem:[%s2296_s2 + $0xa8] sm:$0xff]  ;;  %v1915_v7 = vpop.f32.mrf.mxu1 }
  0xd8   :  { %v338_v15 = vpop.f32.mrf.mxu0  ;;  %v692_v31 = vsub.f32 0.0, %v654_v25  ;;  %v556_v16 = vsub.f32 0.0, %v518_v6 }
  0xd9   :  { %v1882_v19 = vmul.f32 %v541_v12, %v338_v15  ;;  %1485 = vpow2.f32 %v729_v13  ;;  %v691_v20 = vsub.f32 0.0, %v653_v14  ;;  %v656_v35 = vand.u32 2147483647, %v1889_v30  ;;  %v1930_v12 = vld [vmem:[%s2296_s2 + $0xb8] sm:$0xff]  ;;  %v1935_v13 = vld [vmem:[%s2296_s2 + $0xb0] sm:$0xff]  ;;  %v1952_v22 = vpop.f32.mrf.mxu1 }
  0xda   :  { %v1426_v21 = vpop.f32.mrf.mxu0  ;;  %1487 = vpow2.f32 %v731_v23  ;;  %v735_v38 = vmul.f32 1.442695, %v692_v31  ;;  %v558_v31 = vsub.f32 0.0, %v1930_v12 }
  0xdb   :  { %v655_v26 = vand.u32 2147483647, %v1882_v19  ;;  %v733_v28 = vmul.f32 1.442695, %v691_v20  ;;  %v694_v46 = vsub.f32 0.0, %v656_v35  ;;  %v1901_v50 = vmul.f32 %v1426_v21, %v544_v39  ;;  %v1945_v20 = vld [vmem:[%s2296_s2 + $0xc0] sm:$0xff] }
  0xdc   :  { %v348_v29 = vpop.f32.mrf.mxu0  ;;  %v1950_v21 = vld [vmem:[%s2296_s2 + $0xd8] sm:$0xff]  ;;  %v560_v35 = vsub.f32 0.0, %v1940_v18 }
  0xdd   :  { %v693_v32 = vsub.f32 0.0, %v655_v26  ;;  %v1894_v34 = vmul.f32 %v543_v27, %v348_v29  ;;  %1489 = vpow2.f32 %v733_v28  ;;  %v739_v59 = vmul.f32 1.442695, %v694_v46  ;;  %v509_v27 = vld [vmem:[%s2296_s2 + $0x60] sm:$0xff]  ;;  %v1994_v46 = vld [vmem:[%s2296_s2 + $0x108] sm:$0xff] }
  0xde   :  { %v1429_v36 = vpop.f32.mrf.mxu0  ;;  %1491 = vpow2.f32 %v735_v38  ;;  %v658_v62 = vand.u32 2147483647, %v1901_v50  ;;  %v548_v26 = vsub.f32 0.0, %v510_v10  ;;  %v555_v29 = vsub.f32 0.0, %v1925_v11  ;;  %v1975_v38 = vld [vmem:[%s2296_s2 + $0xe0] sm:$0xff]  ;;  %v2022_v10 = vld [vmem:[%s2296_s2 + $0x118] sm:$0xff] }
  0xdf   :  { %v737_v41 = vmul.f32 1.442695, %v693_v32  ;;  %v657_v42 = vand.u32 2147483647, %v1894_v34  ;;  %v1917_v9 = vmul.f32 %v1429_v36, %v546_v63  ;;  %v557_v32 = vsub.f32 0.0, %v1935_v13  ;;  %v1965_v36 = vld [vmem:[%s2296_s2 + $0xd0] sm:$0xff] }
  0xe0   :  { %v358_v47 = vpop.f32.mrf.mxu0  ;;  %v696_v8 = vsub.f32 0.0, %v658_v62  ;;  %v2027_v11 = vld [vmem:[%s2296_s2 + $0x88] sm:$0xff] }
  0xe1   :  { %1493 = vpow2.f32 %v737_v41  ;;  %v695_v53 = vsub.f32 0.0, %v657_v42  ;;  %v1906_v58 = vmul.f32 %v545_v44, %v358_v47  ;;  %v660_v24 = vand.u32 2147483647, %v1917_v9  ;;  %v1989_v44 = vld [vmem:[%s2296_s2 + $0xf0] sm:$0xff] }
  0xe2   :  { %v1482_v40 = vpop.eup %1481  ;;  %v743_v23 = vmul.f32 1.442695, %v696_v8  ;;  %v1432_v25 = vpop.f32.mrf.mxu0  ;;  %v2017_v8 = vld [vmem:[%s2296_s2 + $0x70] sm:$0xff] }
  0xe3   :  { %v1484_v43 = vpop.eup %1483  ;;  %v801_v48 = vadd.f32 1.0, %v1482_v40  ;;  %v741_v1 = vmul.f32 1.442695, %v695_v53  ;;  %v659_v2 = vand.u32 2147483647, %v1906_v58  ;;  %v1977_v40 = vmul.f32 %v1444_v49, %v556_v16 }
  0xe4   :  { %v802_v51 = vadd.f32 1.0, %v1484_v43  ;;  %v1984_v43 = vld [vmem:[%s2296_s2 + $0xf8] sm:$0xff]  ;;  %v698_v49 = vsub.f32 0.0, %v660_v24  ;;  %v368_v53 = vpop.f32.mrf.mxu0 }
  0xe5   :  { %1495 = vlog2.f32 %v801_v48  ;;  %v697_v15 = vsub.f32 0.0, %v659_v2  ;;  %v1996_v48 = vpop.f32.mrf.mxu1 }
  0xe6   :  { %v1486_v45 = vpop.eup %1485  ;;  %1497 = vlog2.f32 %v802_v51  ;;  %v1998_v51 = vmul.f32 %v1432_v25, %v548_v26 }
  0xe7   :  { %v803_v57 = vadd.f32 1.0, %v1486_v45  ;;  %v1488_v60 = vpop.eup %1487  ;;  %v745_v39 = vmul.f32 1.442695, %v697_v15  ;;  %v547_v45 = vsub.f32 0.0, %v509_v27  ;;  %v670_v15 = vand.u32 2147483647, %v1977_v40  ;;  %v2033_v27 = vpop.f32.mrf.mxu1 }
  0xe8   :  { %v804_v4 = vadd.f32 1.0, %v1488_v60 }
  0xe9   :  { %1499 = vlog2.f32 %v803_v57  ;;  %v2006_v57 = vld [vmem:[%s2296_s2 + $0x100] sm:$0xff]  ;;  %v2030_v16 = vmul.f32 %v547_v45, %v368_v53  ;;  %v2042_v45 = vld [vmem:[%s2296_s2 + $0x110] sm:$0xff]  ;;  %v708_v24 = vsub.f32 0.0, %v670_v15  ;;  %v615_v15 = vmax.f32 %v1870_v5, 0.0 }
  0xea   :  { %v1490_v3 = vpop.eup %1489  ;;  %1501 = vpow2.f32 %v739_v59 }
  0xeb   :  { %1503 = vpow2.f32 %v741_v1  ;;  %v805_v14 = vadd.f32 1.0, %v1490_v3  ;;  %v1492_v28 = vpop.eup %1491  ;;  %v552_v3 = vsub.f32 0.0, %v2027_v11  ;;  %v661_v6 = vand.u32 2147483647, %v2030_v16  ;;  %v2053_v1 = vld [vmem:[%s2296_s2 + $0x80] sm:$0xff] }
  0xec   :  { %1505 = vlog2.f32 %v804_v4  ;;  %v806_v47 = vadd.f32 1.0, %v1492_v28  ;;  %v747_v28 = vmul.f32 1.442695, %v698_v49  ;;  %v611_v49 = vmax.f32 %v1850_v52, 0.0  ;;  %v1435_v4 = vpop.f32.mrf.mxu0 }
  0xed   :  { %1507 = vlog2.f32 %v805_v14 }
  0xee   :  { %v1494_v33 = vpop.eup %1493  ;;  %1509 = vpow2.f32 %v743_v23  ;;  %v550_v23 = vsub.f32 0.0, %v512_v56 }
  0xef   :  { %v807_v60 = vadd.f32 1.0, %v1494_v33  ;;  %1511 = vpow2.f32 %v745_v39  ;;  %v662_v33 = vand.u32 2147483647, %v1998_v51  ;;  %v549_v39 = vsub.f32 0.0, %v2017_v8 }
  0xf0   :  { %1513 = vlog2.f32 %v806_v47  ;;  %v612_v47 = vmax.f32 %v1855_v54, 0.0  ;;  %v613_v54 = vmax.f32 %v1857_v55, 0.0  ;;  %v2064_v41 = vmul.f32 %v1435_v4, %v550_v23 }
  0xf1   :  { %1515 = vlog2.f32 %v807_v60  ;;  %v2047_v60 = vmul.f32 %v555_v29, %v1908_v61  ;;  %v700_v52 = vsub.f32 0.0, %v662_v33  ;;  %v2061_v61 = vmul.f32 %v1915_v7, %v558_v31 }
  0xf2   :  { %v1496_v59 = vpop.eup %1495  ;;  %1517 = vpow2.f32 %v747_v28  ;;  %v767_v7 = vmul.f32 1.442695, %v708_v24  ;;  %v614_v31 = vmax.f32 %v1865_v0, 0.0  ;;  %v664_v23 = vand.u32 2147483647, %v2064_v41 }
  0xf3   :  { %v1498_v2 = vpop.eup %1497  ;;  %v840_v26 = vmul.f32 0.6931472, %v1496_v59  ;;  %v669_v28 = vand.u32 2147483647, %v2047_v60  ;;  %v672_v4 = vand.u32 2147483647, %v2061_v61 }
  0xf4   :  { %v842_v56 = vmul.f32 0.6931472, %v1498_v2  ;;  %v2056_v2 = vpop.f32.mrf.mxu1 }
  0xf5   :  { %v915_v62 = vadd.f32 %v840_v26, %v611_v49  ;;  %v551_v26 = vsub.f32 0.0, %v2053_v1 }
  0xf6   :  { %v1500_v14 = vpop.eup %1499 }
  0xf7   :  { %v1502_v25 = vpop.eup %1501  ;;  %v844_v59 = vmul.f32 0.6931472, %v1500_v14  ;;  %v699_v14 = vsub.f32 0.0, %v661_v6  ;;  %v1116_v12 = vsel %vm1115_vm1, %v915_v62, 0.0  ;;  %v2070_v6 = vpop.f32.mrf.mxu1 }
  0xf8   :  { %v1504_v53 = vpop.eup %1503  ;;  %v808_v8 = vadd.f32 1.0, %v1502_v25  ;;  %v916_v25 = vadd.f32 %v842_v56, %v612_v47  ;;  %v378_v47 = vpop.f32.mrf.mxu0 }
  0xf9   :  { %v1506_v63 = vpop.eup %1505  ;;  %v809_v29 = vadd.f32 1.0, %v1504_v53  ;;  %v917_v42 = vadd.f32 %v844_v59, %v613_v54  ;;  %v749_v33 = vmul.f32 1.442695, %v699_v14  ;;  %v751_v53 = vmul.f32 1.442695, %v700_v52 }
  0xfa   :  { %v1508_v55 = vpop.eup %1507  ;;  %v846_v49 = vmul.f32 0.6931472, %v1506_v63  ;;  %1519 = vlog2.f32 %v808_v8  ;;  %v2076_v63 = vmul.f32 %v557_v32, %v1952_v22  ;;  %v1117_v62 = vsel %vm1115_vm1, %v916_v25, 0.0  ;;  %v2084_v22 = vpop.f32.mrf.mxu1 }
  0xfb   :  { %v1510_v56 = vpop.eup %1509  ;;  %1521 = vlog2.f32 %v809_v29  ;;  %v1119_v24 = vsel %vm1115_vm1, %v917_v42, 0.0  ;;  %v848_v0 = vmul.f32 0.6931472, %v1508_v55  ;;  %v1118_v8 = vadd.f32 %v1117_v62, %v1116_v12 }
  0xfc   :  { %1523 = vpow2.f32 %v749_v33  ;;  %v1512_v59 = vpop.eup %1511  ;;  %v918_v54 = vadd.f32 %v846_v49, %v614_v31  ;;  %v707_v52 = vsub.f32 0.0, %v669_v28  ;;  %v2081_v14 = vmul.f32 %v549_v39, %v378_v47  ;;  %v1438_v49 = vpop.f32.mrf.mxu0 }
  0xfd   :  { %v810_v13 = vadd.f32 1.0, %v1510_v56  ;;  %1525 = vpow2.f32 %v751_v53  ;;  %v702_v32 = vsub.f32 0.0, %v664_v23  ;;  %v1514_v29 = vpop.eup %1513  ;;  %v1120_v25 = vadd.f32 %v1119_v24, %v1118_v8  ;;  %v2095_v18 = vpop.f32.mrf.mxu1 }
  0xfe   :  { %1527 = vpow2.f32 %v767_v7  ;;  %v2089_v42 = vmul.f32 %v1996_v48, %v560_v35  ;;  %v663_v55 = vand.u32 2147483647, %v2081_v14  ;;  %v1516_v39 = vpop.eup %1515  ;;  %v710_v28 = vsub.f32 0.0, %v672_v4 }
  0xff   :  { %v671_v5 = vand.u32 2147483647, %v2076_v63  ;;  %v919_v33 = vadd.f32 %v848_v0, %v615_v15  ;;  %v811_v12 = vadd.f32 1.0, %v1512_v59  ;;  %v1121_v31 = vsel %vm1115_vm1, %v918_v54, 0.0  ;;  %v2104_v15 = vld [vmem:[%s2296_s2 + $0x128] sm:$0xff]  ;;  %v1518_v4 = vpop.eup %1517 }
 0x100   :  { %v765_v53 = vmul.f32 1.442695, %v707_v52  ;;  %v616_v7 = vmax.f32 %v1877_v17, 0.0  ;;  %v701_v47 = vsub.f32 0.0, %v663_v55  ;;  %v850_v56 = vmul.f32 0.6931472, %v1514_v29  ;;  %v388_v52 = vpop.f32.mrf.mxu0 }
 0x101   :  { %1529 = vlog2.f32 %v810_v13  ;;  %v755_v35 = vmul.f32 1.442695, %v702_v32  ;;  %v2099_v48 = vmul.f32 %v1438_v49, %v552_v3  ;;  %v1122_v23 = vadd.f32 %v1121_v31, %v1120_v25  ;;  %v516_v32 = vld [vmem:[%s2296_s2 + $0x98] sm:$0xff]  ;;  %v2118_v49 = vpop.f32.mrf.mxu1 }
 0x102   :  { %v674_v62 = vand.u32 2147483647, %v2089_v42  ;;  %v852_v17 = vmul.f32 0.6931472, %v1516_v39  ;;  %v753_v24 = vmul.f32 1.442695, %v701_v47  ;;  %1531 = vlog2.f32 %v811_v12 }
 0x103   :  { %v771_v0 = vmul.f32 1.442695, %v710_v28  ;;  %v709_v59 = vsub.f32 0.0, %v671_v5  ;;  %v1123_v8 = vsel %vm1115_vm1, %v919_v33, 0.0  ;;  %v2298_v3 = vsub.f32 0.0, %v1945_v20 }
 0x104   :  { %v617_v54 = vmax.f32 %v1882_v19, 0.0  ;;  %1533 = vpow2.f32 %v753_v24  ;;  %v572_v13 = vsub.f32 0.0, %v2104_v15  ;;  %v920_v25 = vadd.f32 %v850_v56, %v616_v7 }
 0x105   :  { %v2111_v11 = vmul.f32 %v2298_v3, %v2033_v27  ;;  %v812_v55 = vadd.f32 1.0, %v1518_v4  ;;  %1535 = vpow2.f32 %v755_v35  ;;  %v666_v20 = vand.u32 2147483647, %v2099_v48 }
 0x106   :  { %1537 = vpow2.f32 %v765_v53  ;;  %v1124_v27 = vadd.f32 %v1123_v8, %v1122_v23  ;;  %v712_v39 = vsub.f32 0.0, %v674_v62  ;;  %v921_v19 = vadd.f32 %v852_v17, %v617_v54  ;;  %v1441_v53 = vpop.f32.mrf.mxu0  ;;  %v2129_v23 = vpop.f32.mrf.mxu1 }
 0x107   :  { %v1520_v29 = vpop.eup %1519  ;;  %1539 = vpow2.f32 %v771_v0  ;;  %v769_v5 = vmul.f32 1.442695, %v709_v59  ;;  %v704_v33 = vsub.f32 0.0, %v666_v20  ;;  %v554_v12 = vsub.f32 0.0, %v516_v32 }
 0x108   :  { %v1522_v28 = vpop.eup %1521  ;;  %v618_v47 = vmax.f32 %v1889_v30, 0.0  ;;  %v854_v24 = vmul.f32 0.6931472, %v1520_v29  ;;  %v673_v7 = vand.u32 2147483647, %v2111_v11  ;;  %v2299_v56 = vsub.f32 0.0, %v1950_v21 }
 0x109   :  { %v1524_v31 = vpop.eup %1523  ;;  %v1125_v4 = vsel %vm1115_vm1, %v920_v25, 0.0  ;;  %1541 = vlog2.f32 %v812_v55  ;;  %v759_v17 = vmul.f32 1.442695, %v704_v33  ;;  %v515_v30 = vld [vmem:[%s2296_s2 + $0x90] sm:$0xff]  ;;  %v775_v59 = vmul.f32 1.442695, %v712_v39  ;;  %v2147_v33 = vpop.f32.mrf.mxu1 }
 0x10a   :  { %v2126_v35 = vmul.f32 %v2056_v2, %v2299_v56  ;;  %v813_v62 = vadd.f32 1.0, %v1524_v31  ;;  %v1526_v0 = vpop.eup %1525  ;;  %v1126_v8 = vadd.f32 %v1125_v4, %v1124_v27  ;;  %v1127_v21 = vsel %vm1115_vm1, %v921_v19, 0.0 }
 0x10b   :  { %v2300_v2 = vsub.f32 0.0, %v1965_v36  ;;  %v1528_v54 = vpop.eup %1527  ;;  %v856_v32 = vmul.f32 0.6931472, %v1522_v28  ;;  %v2142_v29 = vmul.f32 %v551_v26, %v388_v52  ;;  %v2144_v25 = vmul.f32 %v1441_v53, %v554_v12 }
 0x10c   :  { %1543 = vlog2.f32 %v813_v62  ;;  %v922_v55 = vadd.f32 %v854_v24, %v618_v47  ;;  %v711_v20 = vsub.f32 0.0, %v673_v7  ;;  %v553_v27 = vsub.f32 0.0, %v515_v30 }
 0x10d   :  { %v2138_v3 = vmul.f32 %v2300_v2, %v2070_v6  ;;  %1545 = vpow2.f32 %v769_v5  ;;  %v619_v39 = vmax.f32 %v1894_v34, 0.0  ;;  %v814_v19 = vadd.f32 1.0, %v1526_v0  ;;  %v398_v6 = vpop.f32.mrf.mxu0  ;;  %v468_v0 = vpop.f32.mrf.mxu1 }
 0x10e   :  { %1547 = vpow2.f32 %v759_v17  ;;  %v665_v36 = vand.u32 2147483647, %v2142_v29  ;;  %v1530_v28 = vpop.eup %1529  ;;  %v822_v31 = vadd.f32 1.0, %v1528_v54  ;;  %v1128_v1 = vadd.f32 %v1127_v21, %v1126_v8 }
 0x10f   :  { %1549 = vpow2.f32 %v775_v59  ;;  %v676_v26 = vand.u32 2147483647, %v2126_v35  ;;  %v675_v52 = vand.u32 2147483647, %v2138_v3  ;;  %v923_v5 = vadd.f32 %v856_v32, %v619_v39  ;;  %v1532_v34 = vpop.eup %1531 }
 0x110   :  { %v703_v12 = vsub.f32 0.0, %v665_v36  ;;  %v668_v47 = vand.u32 2147483647, %v2144_v25  ;;  %v1129_v24 = vsel %vm1115_vm1, %v922_v55, 0.0  ;;  %v2301_v7 = vsub.f32 0.0, %v1970_v37 }
 0x111   :  { %v2302_v53 = vsub.f32 0.0, %v1975_v38  ;;  %v2164_v62 = vmul.f32 %v553_v27, %v398_v6  ;;  %v1534_v17 = vpop.eup %1533  ;;  %v858_v30 = vmul.f32 0.6931472, %v1530_v28  ;;  %1551 = vlog2.f32 %v814_v19  ;;  %v2172_v19 = vld [vmem:[%s2296_s2 + $0x120] sm:$0xff]  ;;  %s1656_s2 = smov [#allocation2]  }
 0x112   :  { %v2157_v56 = vmul.f32 %v2084_v22, %v2301_v7  ;;  %v757_v59 = vmul.f32 1.442695, %v703_v12  ;;  %v706_v8 = vsub.f32 0.0, %v668_v47  ;;  %v1536_v21 = vpop.eup %1535  ;;  %v714_v2 = vsub.f32 0.0, %v676_v26  ;;  %s1304_s28 = sshll.u32 %s1656_s2, 4  ;;  %s1305_s28 = int_to_ptr.vmem [resolvable:$true] %s1304_s28 }
 0x113   :  { %v2162_v4 = vmul.f32 %v2302_v53, %v2095_v18  ;;  %v620_v37 = vmax.f32 %v1901_v50, 0.0  ;;  %v1130_v54 = vadd.f32 %v1129_v24, %v1128_v1  ;;  %v815_v22 = vadd.f32 1.0, %v1534_v17  ;;  %v1538_v32 = vpop.eup %1537  ;;  %s1633_s30 = scalar_lea.vmem %s1305_s28, 16  ;;  %s1637_s4 = scalar_lea.vmem %s1305_s28, 32 }
 0x114   :  { %v1131_v55 = vsel %vm1115_vm1, %v923_v5, 0.0  ;;  %v860_v38 = vmul.f32 0.6931472, %v1532_v34  ;;  %1553 = vpow2.f32 %v757_v59  ;;  %v763_v18 = vmul.f32 1.442695, %v706_v8  ;;  %v1540_v27 = vpop.eup %1539  ;;  %v2177_v5 = vpop.f32.mrf.mxu1  ;;  %p1634_p0 = scmp.ne.s32.totalorder %s1305_s28, %s1633_s30  ;;  %p1638_p1 = scmp.lt.s32.totalorder %s1305_s28, %s1305_s28 }
 0x115   :  { %v713_v39 = vsub.f32 0.0, %v675_v52  ;;  %v677_v36 = vand.u32 2147483647, %v2162_v4  ;;  %1555 = vlog2.f32 %v815_v22  ;;  %v667_v50 = vand.u32 2147483647, %v2164_v62  ;;  %p1639_p2 = scmp.lt.s32.totalorder %s1637_s4, %s1633_s30 }
 0x116   :  { %v924_v6 = vadd.f32 %v858_v30, %v620_v37  ;;  %v678_v28 = vand.u32 2147483647, %v2157_v56  ;;  %v621_v1 = vmax.f32 %v1906_v58, 0.0  ;;  %v816_v26 = vadd.f32 1.0, %v1536_v21  ;;  %v1542_v12 = vpop.eup %1541 }
 0x117   :  { %v1132_v52 = vadd.f32 %v1131_v55, %v1130_v54  ;;  %v2303_v47 = vsub.f32 0.0, %v1989_v44  ;;  %1557 = vpow2.f32 %v763_v18  ;;  %v705_v24 = vsub.f32 0.0, %v667_v50  ;;  %p1640_p3 = por %p1639_p2, %p1638_p1 }
 0x118   :  { %1559 = vlog2.f32 %v822_v31  ;;  %v773_v7 = vmul.f32 1.442695, %v711_v20  ;;  %v925_v53 = vadd.f32 %v860_v38, %v621_v1  ;;  %v571_v17 = vsub.f32 0.0, %v2172_v19  ;;  %v478_v20 = vpop.f32.mrf.mxu1 }
 0x119   :  { %v2182_v34 = vmul.f32 %v2303_v47, %v2129_v23  ;;  %v1544_v30 = vpop.eup %1543  ;;  %v779_v59 = vmul.f32 1.442695, %v714_v2  ;;  %v715_v58 = vsub.f32 0.0, %v677_v36  ;;  %v2304_v8 = vsub.f32 0.0, %v1984_v43  ;;  %p1641_p4 = pnand %p1640_p3, %p1634_p0 }
 0x11a   :  { %v761_v37 = vmul.f32 1.442695, %v705_v24  ;;  %v2190_v54 = vpop.eup %1545  ;;  %v821_v44 = vadd.f32 1.0, %v1538_v32  ;;  %v1133_v23 = vsel %vm1115_vm1, %v924_v6, 0.0  ;;  %v862_v22 = vmul.f32 0.6931472, %v1542_v12 }
 0x11b   :  { %v2188_v21 = vmul.f32 %v2118_v49, %v2304_v8  ;;  %1561 = vlog2.f32 %v816_v26  ;;  %v1548_v31 = vpop.eup %1547  ;;  %v777_v55 = vmul.f32 1.442695, %v713_v39  ;;  %v716_v38 = vsub.f32 0.0, %v678_v28 }
 0x11c   :  { %v1134_v18 = vadd.f32 %v1133_v23, %v1132_v52  ;;  %v679_v2 = vand.u32 2147483647, %v2182_v34  ;;  %v2194_v36 = vpop.eup %1549  ;;  %v622_v43 = vmax.f32 %v1917_v9, 0.0  ;;  %v1135_v49 = vsel %vm1115_vm1, %v925_v53, 0.0  ;;  %v1468_v52 = vpop.f32.mrf.mxu1 }
 0x11d   :  { %v864_v50 = vmul.f32 0.6931472, %v1544_v30  ;;  %1563 = vpow2.f32 %v761_v37  ;;  %v781_v32 = vmul.f32 1.442695, %v715_v58  ;;  %v680_v6 = vand.u32 2147483647, %v2188_v21 }
 0x11e   :  { %1565 = vpow2.f32 %v773_v7  ;;  %v2305_v1 = vsub.f32 0.0, %v2006_v57  ;;  %v926_v39 = vadd.f32 %v862_v22, %v622_v43  ;;  %v623_v28 = vmax.f32 %v2030_v16, 0.0  ;;  %v1552_v47 = vpop.eup %1551 }
 0x11f   :  { %1567 = vlog2.f32 %v821_v44  ;;  %v818_v12 = vadd.f32 1.0, %v1548_v31  ;;  %v1136_v9 = vadd.f32 %v1135_v49, %v1134_v18  ;;  %v717_v24 = vsub.f32 0.0, %v679_v2  ;;  %v488_v31 = vpop.f32.mrf.mxu1 }
 0x120   :  { %v2201_v26 = vmul.f32 %v2305_v1, %v468_v0  ;;  %1569 = vpow2.f32 %v777_v55  ;;  %v2306_v53 = vsub.f32 0.0, %v1994_v46  ;;  %v824_v30 = vadd.f32 1.0, %v1540_v27 }
 0x121   :  { %1571 = vpow2.f32 %v779_v59  ;;  %v783_v57 = vmul.f32 1.442695, %v716_v38  ;;  %v927_v0 = vadd.f32 %v864_v50, %v623_v28  ;;  %v1554_v58 = vpop.eup %1553  ;;  %v718_v8 = vsub.f32 0.0, %v680_v6 }
 0x122   :  { %v2207_v7 = vmul.f32 %v2147_v33, %v2306_v53  ;;  %1573 = vpow2.f32 %v781_v32  ;;  %v681_v16 = vand.u32 2147483647, %v2201_v26  ;;  %v2307_v37 = vsub.f32 0.0, %v2042_v45  ;;  %v1556_v23 = vpop.eup %1555 }
 0x123   :  { %v1137_v22 = vsel %vm1115_vm1, %v926_v39, 0.0  ;;  %v866_v46 = vmul.f32 0.6931472, %v1552_v47  ;;  %1575 = vlog2.f32 %v818_v12  ;;  %v817_v33 = vadd.f32 1.0, %v1554_v58 }
 0x124   :  { %v2212_v44 = vmul.f32 %v2307_v37, %v478_v20  ;;  %v624_v27 = vmax.f32 %v1998_v51, 0.0  ;;  %v785_v59 = vmul.f32 1.442695, %v717_v24  ;;  %v1138_v55 = vadd.f32 %v1137_v22, %v1136_v9  ;;  %v1558_v18 = vpop.eup %1557 }
 0x125   :  { %v682_v38 = vand.u32 2147483647, %v2207_v7  ;;  %v1139_v2 = vsel %vm1115_vm1, %v927_v0, 0.0  ;;  %v868_v43 = vmul.f32 0.6931472, %v1556_v23  ;;  %v2308_v45 = vsub.f32 0.0, %v2022_v10  ;;  %v2223_v49 = vpop.eup %1559 }
 0x126   :  { %1577 = vlog2.f32 %v817_v33  ;;  %v719_v50 = vsub.f32 0.0, %v681_v16  ;;  %v2227_v51 = vmul.f32 %v1468_v52, %v572_v13  ;;  %v820_v32 = vadd.f32 1.0, %v1558_v18 }
 0x127   :  { %v2221_v20 = vmul.f32 %v2177_v5, %v2308_v45  ;;  %v2231_v6 = vmul.f32 %v571_v17, %v488_v31  ;;  %1579 = vlog2.f32 %v824_v30  ;;  %v928_v1 = vadd.f32 %v866_v46, %v624_v27 }
 0x128   :  { %v625_v10 = vmax.f32 %v2081_v14, 0.0  ;;  %v683_v5 = vand.u32 2147483647, %v2212_v44  ;;  %v1562_v39 = vpop.eup %1561  ;;  %1581 = vpow2.f32 %v783_v57  ;;  %v787_v28 = vmul.f32 1.442695, %v718_v8 }
 0x129   :  { %v1140_v12 = vadd.f32 %v1139_v2, %v1138_v55  ;;  %v720_v47 = vsub.f32 0.0, %v682_v38  ;;  %v823_v15 = vadd.f32 1.0, %v2190_v54  ;;  %v684_v52 = vand.u32 2147483647, %v2221_v20 }
 0x12a   :  { %v929_v13 = vadd.f32 %v868_v43, %v625_v10  ;;  %1583 = vlog2.f32 %v820_v32  ;;  %v1564_v19 = vpop.eup %1563  ;;  %v789_v17 = vmul.f32 1.442695, %v719_v50  ;;  %v686_v9 = vand.u32 2147483647, %v2227_v51 }
 0x12b   :  { %1585 = vpow2.f32 %v785_v59  ;;  %v685_v14 = vand.u32 2147483647, %v2231_v6  ;;  %v1566_v24 = vpop.eup %1565  ;;  %v1141_v53 = vsel %vm1115_vm1, %v928_v1, 0.0  ;;  %v870_v30 = vmul.f32 0.6931472, %v1562_v39 }
 0x12c   :  { %v721_v57 = vsub.f32 0.0, %v683_v5  ;;  %v819_v0 = vadd.f32 1.0, %v1564_v19  ;;  %v1568_v58 = vpop.eup %1567  ;;  %v826_v54 = vadd.f32 1.0, %v2194_v36  ;;  %1587 = vpow2.f32 %v787_v28 }
 0x12d   :  { %v791_v8 = vmul.f32 1.442695, %v720_v47  ;;  %v1142_v16 = vadd.f32 %v1141_v53, %v1140_v12  ;;  %v1570_v37 = vpop.eup %1569  ;;  %v626_v23 = vmax.f32 %v2064_v41, 0.0  ;;  %v1143_v22 = vsel %vm1115_vm1, %v929_v13, 0.0 }
 0x12e   :  { %v722_v46 = vsub.f32 0.0, %v684_v52  ;;  %1589 = vlog2.f32 %v819_v0  ;;  %v1572_v33 = vpop.eup %1571  ;;  %v825_v31 = vadd.f32 1.0, %v1566_v24  ;;  %v724_v27 = vsub.f32 0.0, %v686_v9 }
 0x12f   :  { %1591 = vlog2.f32 %v823_v15  ;;  %v723_v59 = vsub.f32 0.0, %v685_v14  ;;  %v1574_v55 = vpop.eup %1573  ;;  %v930_v38 = vadd.f32 %v870_v30, %v626_v23  ;;  %v793_v18 = vmul.f32 1.442695, %v721_v57 }
 0x130   :  { %1593 = vpow2.f32 %v789_v17  ;;  %v1576_v36 = vpop.eup %1575  ;;  %v827_v2 = vadd.f32 1.0, %v1570_v37  ;;  %v1144_v43 = vadd.f32 %v1143_v22, %v1142_v16  ;;  %v795_v45 = vmul.f32 1.442695, %v722_v46 }
 0x131   :  { %1595 = vlog2.f32 %v826_v54  ;;  %v627_v50 = vmax.f32 %v2142_v29, 0.0  ;;  %v799_v32 = vmul.f32 1.442695, %v724_v27  ;;  %v797_v1 = vmul.f32 1.442695, %v723_v59 }
 0x132   :  { %1597 = vpow2.f32 %v791_v8  ;;  %v1145_v10 = vsel %vm1115_vm1, %v930_v38, 0.0  ;;  %v874_v5 = vmul.f32 0.6931472, %v1576_v36  ;;  %v828_v15 = vadd.f32 1.0, %v1572_v33 }
 0x133   :  { %v1578_v41 = vpop.eup %1577  ;;  %1599 = vlog2.f32 %v825_v31  ;;  %v1146_v12 = vadd.f32 %v1145_v10, %v1144_v43  ;;  %v628_v13 = vmax.f32 %v2099_v48, 0.0  ;;  %v829_v17 = vadd.f32 1.0, %v1574_v55 }
 0x134   :  { %1601 = vpow2.f32 %v793_v18  ;;  %v872_v39 = vmul.f32 0.6931472, %v1578_v41  ;;  %v1580_v28 = vpop.eup %1579  ;;  %v631_v54 = vmax.f32 %v2047_v60, 0.0  ;;  %v880_v8 = vmul.f32 0.6931472, %v1568_v58 }
 0x135   :  { %1603 = vlog2.f32 %v827_v2  ;;  %v1582_v47 = vpop.eup %1581  ;;  %v932_v9 = vadd.f32 %v874_v5, %v628_v13  ;;  %v630_v23 = vmax.f32 %v2144_v25, 0.0  ;;  %v629_v22 = vmax.f32 %v2164_v62, 0.0 }
 0x136   :  { %1605 = vpow2.f32 %v795_v45  ;;  %v931_v52 = vadd.f32 %v872_v39, %v627_v50  ;;  %v830_v30 = vadd.f32 1.0, %v1582_v47  ;;  %v632_v31 = vmax.f32 %v1977_v40, 0.0 }
 0x137   :  { %v1584_v19 = vpop.eup %1583  ;;  %1607 = vpow2.f32 %v799_v32  ;;  %v1149_v37 = vsel %vm1115_vm1, %v932_v9, 0.0  ;;  %v882_v27 = vmul.f32 0.6931472, %v2223_v49  ;;  %v633_v36 = vmax.f32 %v2076_v63, 0.0 }
 0x138   :  { %v1586_v29 = vpop.eup %1585  ;;  %v1147_v14 = vsel %vm1115_vm1, %v931_v52, 0.0  ;;  %1609 = vpow2.f32 %v797_v1  ;;  %v878_v57 = vmul.f32 0.6931472, %v1584_v19  ;;  %v935_v25 = vadd.f32 %v880_v8, %v631_v54 }
 0x139   :  { %v1148_v24 = vadd.f32 %v1147_v14, %v1146_v12  ;;  %v1588_v53 = vpop.eup %1587  ;;  %1611 = vlog2.f32 %v828_v15  ;;  %v831_v48 = vadd.f32 1.0, %v1586_v29  ;;  %v936_v40 = vadd.f32 %v882_v27, %v632_v31 }
 0x13a   :  { %1613 = vlog2.f32 %v829_v17  ;;  %v832_v60 = vadd.f32 1.0, %v1588_v53  ;;  %v934_v58 = vadd.f32 %v878_v57, %v630_v23  ;;  %v634_v49 = vmax.f32 %v2061_v61, 0.0 }
 0x13b   :  { %v1590_v0 = vpop.eup %1589  ;;  %v1150_v59 = vadd.f32 %v1149_v37, %v1148_v24  ;;  %1615 = vlog2.f32 %v830_v30  ;;  %v886_v1 = vmul.f32 0.6931472, %v1580_v28  ;;  %v635_v12 = vmax.f32 %v2111_v11, 0.0 }
 0x13c   :  { %v1592_v16 = vpop.eup %1591  ;;  %v876_v46 = vmul.f32 0.6931472, %v1590_v0  ;;  %1617 = vlog2.f32 %v831_v48  ;;  %v1153_v5 = vsel %vm1115_vm1, %v934_v58, 0.0  ;;  %v1155_v13 = vsel %vm1115_vm1, %v935_v25, 0.0 }
 0x13d   :  { %v1594_v33 = vpop.eup %1593  ;;  %v884_v2 = vmul.f32 0.6931472, %v1592_v16  ;;  %1619 = vlog2.f32 %v832_v60  ;;  %v1157_v61 = vsel %vm1115_vm1, %v936_v40, 0.0  ;;  %v636_v28 = vmax.f32 %v2089_v42, 0.0 }
 0x13e   :  { %v1596_v55 = vpop.eup %1595  ;;  %v933_v38 = vadd.f32 %v876_v46, %v629_v22  ;;  %v833_v62 = vadd.f32 1.0, %v1594_v33  ;;  %v938_v9 = vadd.f32 %v886_v1, %v634_v49  ;;  %v637_v30 = vmax.f32 %v2138_v3, 0.0 }
 0x13f   :  { %v1598_v18 = vpop.eup %1597  ;;  %v937_v63 = vadd.f32 %v884_v2, %v633_v36  ;;  %v890_v14 = vmul.f32 0.6931472, %v1596_v55  ;;  %v638_v37 = vmax.f32 %v2126_v35, 0.0  ;;  %v639_v31 = vmax.f32 %v2162_v4, 0.0 }
 0x140   :  { %v1600_v43 = vpop.eup %1599  ;;  %v1151_v45 = vsel %vm1115_vm1, %v933_v38, 0.0  ;;  %v834_v10 = vadd.f32 1.0, %v1598_v18  ;;  %1621 = vlog2.f32 %v833_v62  ;;  %v1161_v23 = vsel %vm1115_vm1, %v938_v9, 0.0 }
 0x141   :  { %v1602_v41 = vpop.eup %1601  ;;  %v1152_v50 = vadd.f32 %v1151_v45, %v1150_v59  ;;  %v888_v52 = vmul.f32 0.6931472, %v1600_v43  ;;  %v1159_v11 = vsel %vm1115_vm1, %v937_v63, 0.0  ;;  %v940_v22 = vadd.f32 %v890_v14, %v636_v28 }
 0x142   :  { %v1604_v32 = vpop.eup %1603  ;;  %v835_v19 = vadd.f32 1.0, %v1602_v41  ;;  %1623 = vlog2.f32 %v834_v10  ;;  %v640_v18 = vmax.f32 %v2157_v56, 0.0  ;;  %v641_v62 = vmax.f32 %v2182_v34, 0.0 }
 0x143   :  { %v1606_v39 = vpop.eup %1605  ;;  %v1154_v47 = vadd.f32 %v1153_v5, %v1152_v50  ;;  %v939_v8 = vadd.f32 %v888_v52, %v635_v12  ;;  %v892_v48 = vmul.f32 0.6931472, %v1604_v32  ;;  %v1165_v35 = vsel %vm1115_vm1, %v940_v22, 0.0 }
 0x144   :  { %v1608_v15 = vpop.eup %1607  ;;  %v836_v24 = vadd.f32 1.0, %v1606_v39  ;;  %1625 = vlog2.f32 %v835_v19  ;;  %v642_v32 = vmax.f32 %v2188_v21, 0.0  ;;  %v960_v5 = vlaneseq }
 0x145   :  { %v1610_v17 = vpop.eup %1609  ;;  %v1156_v29 = vadd.f32 %v1155_v13, %v1154_v47  ;;  %v838_v57 = vadd.f32 1.0, %v1608_v15  ;;  %v1163_v27 = vsel %vm1115_vm1, %v939_v8, 0.0  ;;  %v941_v59 = vadd.f32 %v892_v48, %v637_v30 }
 0x146   :  { %v1612_v53 = vpop.eup %1611  ;;  %v837_v16 = vadd.f32 1.0, %v1610_v17  ;;  %1627 = vlog2.f32 %v836_v24  ;;  %v643_v12 = vmax.f32 %v2201_v26, 0.0  ;;  %v644_v19 = vmax.f32 %v2207_v7, 0.0 }
 0x147   :  { %v1158_v0 = vadd.f32 %v1157_v61, %v1156_v29  ;;  %v1614_v54 = vpop.eup %1613  ;;  %v894_v46 = vmul.f32 0.6931472, %v1612_v53  ;;  %1629 = vlog2.f32 %v838_v57  ;;  %v1167_v25 = vsel %vm1115_vm1, %v941_v59, 0.0 }
 0x148   :  { %v1616_v33 = vpop.eup %1615  ;;  %v896_v55 = vmul.f32 0.6931472, %v1614_v54  ;;  %1631 = vlog2.f32 %v837_v16  ;;  %v961_v21 = vshrl.u32 %v960_v5, 7  ;;  %v645_v24 = vmax.f32 %v2212_v44, 0.0 }
 0x149   :  { %v1160_v42 = vadd.f32 %v1159_v11, %v1158_v0  ;;  %v1618_v60 = vpop.eup %1617  ;;  %v942_v38 = vadd.f32 %v894_v46, %v638_v37  ;;  %v898_v36 = vmul.f32 0.6931472, %v1616_v33  ;;  %v646_v0 = vmax.f32 %v2221_v20, 0.0 }
 0x14a   :  { %v1620_v2 = vpop.eup %1619  ;;  %v943_v4 = vadd.f32 %v896_v55, %v639_v31  ;;  %v900_v45 = vmul.f32 0.6931472, %v1618_v60  ;;  %v648_v7 = vmax.f32 %v2227_v51, 0.0  ;;  %v998_v48 = vadd.s32 296, %v961_v21 }
 0x14b   :  { %v1162_v3 = vadd.f32 %v1161_v23, %v1160_v42  ;;  %v1169_v49 = vsel %vm1115_vm1, %v942_v38, 0.0  ;;  %v944_v50 = vadd.f32 %v898_v36, %v640_v18  ;;  %v902_v1 = vmul.f32 0.6931472, %v1620_v2 }
 0x14c   :  { %v1171_v39 = vsel %vm1115_vm1, %v943_v4, 0.0  ;;  %v945_v63 = vadd.f32 %v900_v45, %v641_v62  ;;  %v647_v23 = vmax.f32 %v2231_v6, 0.0  ;;  %vm1076_vm2 = vcmp.lt.s32.totalorder %v998_v48, 300 }
 0x14d   :  { %v1164_v58 = vadd.f32 %v1163_v27, %v1162_v3  ;;  %v1622_v41 = vpop.eup %1621  ;;  %v1173_v13 = vsel %vm1115_vm1, %v944_v50, 0.0  ;;  %v946_v52 = vadd.f32 %v902_v1, %v642_v32  ;;  %v1655_v18 = vmov 0.0  }
 0x14e   :  { %v904_v47 = vmul.f32 0.6931472, %v1622_v41  ;;  %v1175_v9 = vsel %vm1115_vm1, %v945_v63, 0.0  ;;  %84 = vst.msk [vmem:[#allocation2] sm:$0x1] %vm83_vm3, %v1655_v18 }
 0x14f   :  { %v1166_v43 = vadd.f32 %v1165_v35, %v1164_v58  ;;  %v1624_v10 = vpop.eup %1623  ;;  %v1177_v30 = vsel %vm1115_vm1, %v946_v52, 0.0 }
 0x150   :  { %v906_v17 = vmul.f32 0.6931472, %v1624_v10  ;;  %v947_v14 = vadd.f32 %v904_v47, %v643_v12 }
 0x151   :  { %v1168_v40 = vadd.f32 %v1167_v25, %v1166_v43  ;;  %v1626_v15 = vpop.eup %1625 }
 0x152   :  { %v908_v53 = vmul.f32 0.6931472, %v1626_v15  ;;  %v948_v57 = vadd.f32 %v906_v17, %v644_v19  ;;  %v1179_v37 = vsel %vm1115_vm1, %v947_v14, 0.0 }
 0x153   :  { %v1170_v56 = vadd.f32 %v1169_v49, %v1168_v40  ;;  %v1628_v61 = vpop.eup %1627 }
 0x154   :  { %v1630_v29 = vpop.eup %1629  ;;  %v910_v54 = vmul.f32 0.6931472, %v1628_v61  ;;  %v949_v42 = vadd.f32 %v908_v53, %v645_v24  ;;  %v1181_v46 = vsel %vm1115_vm1, %v948_v57, 0.0 }
 0x155   :  { %v1172_v34 = vadd.f32 %v1171_v39, %v1170_v56  ;;  %v1632_v26 = vpop.eup %1631  ;;  %v914_v8 = vmul.f32 0.6931472, %v1630_v29  ;;  %v1038_v41 = vld [vmem:[#allocation2] sm:$0x1] }
 0x156   :  { %v912_v44 = vmul.f32 0.6931472, %v1632_v26  ;;  %v950_v33 = vadd.f32 %v910_v54, %v646_v0  ;;  %v1183_v20 = vsel %vm1115_vm1, %v949_v42, 0.0 }
 0x157   :  { %v1174_v28 = vadd.f32 %v1173_v13, %v1172_v34  ;;  %v952_v31 = vadd.f32 %v914_v8, %v648_v7 }
 0x158   :  { %v951_v27 = vadd.f32 %v912_v44, %v647_v23  ;;  %v1185_v59 = vsel %vm1115_vm1, %v950_v33, 0.0 }
 0x159   :  { %v1176_v11 = vadd.f32 %v1175_v9, %v1174_v28  ;;  %v1114_v55 = vsel %vm1076_vm2, %v952_v31, 0.0 }
 0x15a   :  { %v1187_v58 = vsel %vm1115_vm1, %v951_v27, 0.0  ;;  %v1189_v6 = vsel %vm1115_vm1, %v1114_v55, 0.0 }
 0x15b   :  { %v1178_v16 = vadd.f32 %v1177_v30, %v1176_v11 }
 0x15d   :  { %v1180_v22 = vadd.f32 %v1179_v37, %v1178_v16 }
 0x15f   :  { %v1182_v3 = vadd.f32 %v1181_v46, %v1180_v22 }
 0x161   :  { %v1184_v51 = vadd.f32 %v1183_v20, %v1182_v3 }
 0x163   :  { %v1186_v60 = vadd.f32 %v1185_v59, %v1184_v51 }
 0x165   :  { %v1188_v35 = vadd.f32 %v1187_v58, %v1186_v60 }
 0x167   :  { %v1190_v38 = vadd.f32 %v1189_v6, %v1188_v35 }
 0x169   :  { %1191 = vadd.xlane.f32.xlu0 %v1190_v38 }
 0x1f2   :  { %v1192_v36 = vpop.xlane.xlu0 %1191 }
 0x1f3   :  { %v1193_v2 = vrot.slane %v1192_v36, 4 }
 0x1f5   :  { %v1194_v43 = vadd.f32 %v1193_v2, %v1192_v36 }
 0x1f7   :  { %v1195_v25 = vrot.slane %v1194_v43, 2 }
 0x1f9   :  { %v1196_v4 = vadd.f32 %v1195_v25, %v1194_v43 }
 0x1fb   :  { %v1197_v62 = vrot.slane %v1196_v4, 1 }
 0x1fd   :  { %v1198_v45 = vadd.f32 %v1197_v62, %v1196_v4 }
 0x1ff   :  { %1477 = vpush %v1198_v45 }
 0x230   :  { %s1478_s29 = spop %1477 }
 0x231   :  { %v1200_v40 = vstv %s1478_s29 }
 0x232   :  { %v1201_v49 = vadd.f32 %v1200_v40, %v1038_v41 }
 0x234   :  { %1203 = vst.msk [vmem:[#allocation2] sm:$0x1] %vm83_vm3, %v1201_v49 }
 0x235   :  { %1644 = shalt.err (!%p1641_p4)
}
 0x236   :  { %1307 = dma.vmem_to_hbm [thread:$0]  %s1305_s28, 16, %s2297_s3, [#allocation3]  }
 0x237   :  { %1653 = dma.done.wait [#allocation3], 16  }
 0x238   :  { %1654 = vsyncadd [#allocation3], 4294967280 }
 0x239   :  { %1311 = vsyncpa [#allocation3], 1 }

</bundles_post_ra>
